<compile_context>
chip_gen: v7x
topology: tpu7x:2x2x1
jax: 0.10.0
libtpu: 0.0.40
codegen_flags: <defaults>
</compile_context>

<pallas_src>
import functools

import jax
import jax.numpy as jnp
from jax import lax
from jax.experimental import pallas as pl
from jax.experimental.pallas import tpu as pltpu


# ----------------------------------------------------------------------------
# Fused Bottleneck kernel (one grid step == one batch image)
# ----------------------------------------------------------------------------
def _bottleneck_kernel(x_ref, w1_ref, w2_ref, w3_ref, b1_ref, b2_ref, b3_ref,
                       o_ref, t1_ref, *, H, W, planes, pad):
    """Refs:
      x_ref : (1, H*W, Cin)         f32  input image (NHWC flattened to rows)
      w1_ref: (Cin, planes)         bf16 conv1 weight * bn1 scale
      w2_ref: (9, planes, planes)   bf16 conv2 weight * bn2 scale, (dy,dx) taps
      w3_ref: (planes, Cexp)        bf16 conv3 weight * bn3 scale
      b*_ref: (1, C)                f32  folded BatchNorm biases
      o_ref : (1, H*W, Cexp)        output (lane-dense store)
      t1_ref: (2*pad + H*W, planes) f32 VMEM scratch: conv1 output with `pad`
              zero rows above/below (pad >= W+1, multiple of 8).
    """
    HW = H * W

    # ---- conv1 (1x1) + bn1 + relu -------------------------------------------
    y1 = jnp.dot(x_ref[0].astype(jnp.bfloat16), w1_ref[...],
                 preferred_element_type=jnp.float32)
    y1 = jnp.maximum(y1 + b1_ref[...], 0.0)

    # Zero only the tiny pad regions; interior store is sublane-aligned.
    # (Zeroed every step, NOT once under pl.when(pid==0): with a "parallel"
    #  batch axis each TensorCore owns its own scratch and would miss the init.)
    zpad = jnp.zeros((pad, planes), jnp.float32)
    t1_ref[0:pad, :] = zpad
    t1_ref[pad + HW:2 * pad + HW, :] = zpad
    t1_ref[pad:pad + HW, :] = y1

    # ---- conv2 (3x3, pad=1, stride=1) + bn2 + relu ---------------------------
    # Nine accumulating MXU dots over row-shifted views of the flattened
    # scratch.  Rows that fall outside the image in the H direction read the
    # zeroed pad rows; the two W-boundary columns are masked (exactly the rows
    # where a flattened +-1 shift would wrap into the neighbouring image row).
    xcol = lax.broadcasted_iota(jnp.int32, (HW, 1), 0) % W
    acc = jnp.zeros((HW, planes), jnp.float32)
    for dy in range(3):
        for dx in range(3):
            shift = (dy - 1) * W + (dx - 1)
            tap = t1_ref[pad + shift:pad + shift + HW, :]
            if dx == 0:
                tap = jnp.where(xcol > 0, tap, 0.0)
            elif dx == 2:
                tap = jnp.where(xcol < W - 1, tap, 0.0)
            acc = acc + jnp.dot(tap.astype(jnp.bfloat16), w2_ref[dy * 3 + dx],
                                preferred_element_type=jnp.float32)
    y2 = jnp.maximum(acc + b2_ref[...], 0.0)

    # ---- conv3 (1x1) + bn3 + identity residual + relu ------------------------
    y3 = jnp.dot(y2.astype(jnp.bfloat16), w3_ref[...],
                 preferred_element_type=jnp.float32)
    # Residual: re-read x from VMEM here (not kept live across the matmuls).
    y3 = jnp.maximum(y3 + b3_ref[...] + x_ref[0], 0.0)
    o_ref[0] = y3.astype(o_ref.dtype)


# ----------------------------------------------------------------------------
# Wrapper: BN folding, weight prep, pallas_call
# ----------------------------------------------------------------------------
def _fold_bn(gamma, beta, mean, var, eps=1e-5):
    scale = gamma / jnp.sqrt(var + eps)
    bias = beta - mean * scale
    return scale[None, :], bias[None, :]  # (1, C)


def bottleneck_forward_nhwc(x_nhwc, p):
    """Forward pass of Bottleneck (stride=1, downsample=None, eval-mode BN)."""
    B, H, W, Cin = x_nhwc.shape
    planes = p["w1"].shape[1]
    Cexp = p["w3"].shape[1]
    assert Cin == Cexp, "identity residual requires inplanes == planes * 4"
    HW = H * W
    assert HW % 8 == 0, "H*W must be a multiple of 8 (sublane alignment)"
    pad = -(-(W + 1) // 8) * 8  # >= W+1, multiple of 8 (aligned interior store)

    s1, b1 = _fold_bn(p["g1"], p["be1"], p["m1"], p["v1"])
    s2, b2 = _fold_bn(p["g2"], p["be2"], p["m2"], p["v2"])
    s3, b3 = _fold_bn(p["g3"], p["be3"], p["m3"], p["v3"])

    # Fold BN scale into the conv weights (free one-time transform) and cast
    # them to bf16 for the MXU.  (dy, dx, cin)-tap flatten of the 3x3 weight
    # matches the shifted-view order used in the kernel.
    w1f = (p["w1"] * s1).astype(jnp.bfloat16)                          # (Cin, planes)
    w2f = (p["w2"] * s2).reshape(9, planes, planes).astype(jnp.bfloat16)
    w3f = (p["w3"] * s3).astype(jnp.bfloat16)                          # (planes, Cexp)

    x_rows = x_nhwc.reshape(B, HW, Cin)  # metadata-only reshape (NHWC row slab)

    kernel = functools.partial(_bottleneck_kernel, H=H, W=W, planes=planes,
                               pad=pad)
    const2 = lambda b: (0, 0)     # resident weights / biases: fetched once
    const3 = lambda b: (0, 0, 0)

    out = pl.pallas_call(
        kernel,
        out_shape=jax.ShapeDtypeStruct((B, HW, Cexp), x_nhwc.dtype),
        grid=(B,),
        in_specs=[
            pl.BlockSpec((1, HW, Cin), lambda b: (b, 0, 0)),   # x
            pl.BlockSpec((Cin, planes), const2),               # w1 * s1
            pl.BlockSpec((9, planes, planes), const3),         # w2 * s2
            pl.BlockSpec((planes, Cexp), const2),              # w3 * s3
            pl.BlockSpec((1, planes), const2),                 # b1
            pl.BlockSpec((1, planes), const2),                 # b2
            pl.BlockSpec((1, Cexp), const2),                   # b3
        ],
        out_specs=pl.BlockSpec((1, HW, Cexp), lambda b: (b, 0, 0)),
        scratch_shapes=[pltpu.VMEM((2 * pad + HW, planes), jnp.float32)],
        compiler_params=pltpu.CompilerParams(
            dimension_semantics=("parallel",),
            vmem_limit_bytes=32 * 1024 * 1024),
    )(x_rows, w1f, w2f, w3f, b1, b2, b3)

    return out.reshape(B, H, W, Cexp)


def bottleneck_forward(x_nchw, p):
    # TODO(synk): the NCHW interface matches the PyTorch module; when stacking
    # blocks, stay NHWC and drop these transposes (pure HBM traffic).
    x = jnp.transpose(x_nchw, (0, 2, 3, 1))       # NCHW -> NHWC
    out = bottleneck_forward_nhwc(x, p)
    return jnp.transpose(out, (0, 3, 1, 2))       # NHWC -> NCHW


# ----------------------------------------------------------------------------
# Pure-JAX reference for verification
# ----------------------------------------------------------------------------
def bottleneck_reference(x_nchw, p):
    x = jnp.transpose(x_nchw, (0, 2, 3, 1))
    s1, b1 = _fold_bn(p["g1"], p["be1"], p["m1"], p["v1"])
    s2, b2 = _fold_bn(p["g2"], p["be2"], p["m2"], p["v2"])
    s3, b3 = _fold_bn(p["g3"], p["be3"], p["m3"], p["v3"])
    dn = ("NHWC", "HWIO", "NHWC")

    out = lax.conv_general_dilated(x, p["w1"][None, None], (1, 1), "VALID",
                                   dimension_numbers=dn)
    out = jnp.maximum(out * s1 + b1, 0.0)
    out = lax.conv_general_dilated(out, p["w2"], (1, 1), "SAME",
                                   dimension_numbers=dn)
    out = jnp.maximum(out * s2 + b2, 0.0)
    out = lax.conv_general_dilated(out, p["w3"][None, None], (1, 1), "VALID",
                                   dimension_numbers=dn)
    out = jnp.maximum(out * s3 + b3 + x, 0.0)
    return jnp.transpose(out, (0, 3, 1, 2))


def init_params(key, inplanes, planes):
    exp = 4
    ks = jax.random.split(key, 12)
    f32 = jnp.float32
    return {
        # conv weights stored in matmul / HWIO layouts (deterministic init)
        "w1": jax.random.normal(ks[0], (inplanes, planes), f32) * 0.1,
        "w2": jax.random.normal(ks[1], (3, 3, planes, planes), f32) * 0.1,
        "w3": jax.random.normal(ks[2], (planes, planes * exp), f32) * 0.1,
        # bn1
        "g1": 1.0 + 0.1 * jax.random.normal(ks[3], (planes,), f32),
        "be1": 0.1 * jax.random.normal(ks[4], (planes,), f32),
        "m1": 0.1 * jax.random.normal(ks[5], (planes,), f32),
        "v1": 1.0 + 0.1 * jax.random.uniform(ks[6], (planes,), f32),
        # bn2
        "g2": 1.0 + 0.1 * jax.random.normal(ks[7], (planes,), f32),
        "be2": 0.1 * jax.random.normal(ks[8], (planes,), f32),
        "m2": 0.1 * jax.random.normal(ks[9], (planes,), f32),
        "v2": 1.0 + 0.1 * jax.random.uniform(ks[10], (planes,), f32),
        # bn3
        "g3": 1.0 + 0.1 * jax.random.normal(ks[11], (planes * exp,), f32),
        "be3": jnp.zeros((planes * exp,), f32),
        "m3": jnp.zeros((planes * exp,), f32),
        "v3": jnp.ones((planes * exp,), f32),
    }


if __name__ == "__main__":
    key = jax.random.PRNGKey(0)
    k_x, k_p = jax.random.split(key)

    # expansion=4 -> output channels = inplanes (identity residual path);
    # Cexp = 128 keeps the output store lane-dense.
    inplanes, planes = 128, 32
    B, H, W = 2, 16, 16
    x = jax.random.normal(k_x, (B, inplanes, H, W), jnp.float32)  # NCHW input
    params = init_params(k_p, inplanes, planes)

    out = jax.jit(bottleneck_forward)(x, params)
    out = jax.block_until_ready(out)

    ref = bottleneck_reference(x, params)
    assert out.shape == (B, planes * 4, H, W)
    # bf16 MXU operands with f32 accumulation -> slightly looser tolerance.
    max_diff = jnp.max(jnp.abs(out - ref))
    assert jnp.allclose(out, ref, atol=5e-2, rtol=5e-2), \
        f"max abs diff {max_diff}"

    print("KERNEL_OK")
</pallas_src>

<mosaic_0001>
module attributes {stable_mosaic.version = 11 : i64} {
  func.func @_bottleneck_kernel(%arg0: i32, %arg1: memref<1x256x128xf32, #tpu.memory_space<vmem>>, %arg2: memref<128x32xbf16, #tpu.memory_space<vmem>>, %arg3: memref<9x32x32xbf16, #tpu.memory_space<vmem>>, %arg4: memref<32x128xbf16, #tpu.memory_space<vmem>>, %arg5: memref<1x32xf32, #tpu.memory_space<vmem>>, %arg6: memref<1x32xf32, #tpu.memory_space<vmem>>, %arg7: memref<1x128xf32, #tpu.memory_space<vmem>>, %arg8: memref<1x256x128xf32, #tpu.memory_space<vmem>>, %arg9: memref<304x32xf32, #tpu.memory_space<vmem>>) attributes {dimension_semantics = [#tpu.dimension_semantics<parallel>], iteration_bounds = array<i64: 2>, scalar_prefetch = 0 : i64, scratch_operands = 1 : i64, tpu.core_type = #tpu.core_type<tc>, window_params = [{transform_indices = @transform_0, window_bounds = array<i64: 1, 256, 128>}, {pipeline_mode = #tpu.pipeline_mode<synchronous>, transform_indices = @transform_1, window_bounds = array<i64: 128, 32>}, {pipeline_mode = #tpu.pipeline_mode<synchronous>, transform_indices = @transform_2, window_bounds = array<i64: 9, 32, 32>}, {pipeline_mode = #tpu.pipeline_mode<synchronous>, transform_indices = @transform_3, window_bounds = array<i64: 32, 128>}, {pipeline_mode = #tpu.pipeline_mode<synchronous>, transform_indices = @transform_4, window_bounds = array<i64: 1, 32>}, {pipeline_mode = #tpu.pipeline_mode<synchronous>, transform_indices = @transform_5, window_bounds = array<i64: 1, 32>}, {pipeline_mode = #tpu.pipeline_mode<synchronous>, transform_indices = @transform_6, window_bounds = array<i64: 1, 128>}, {transform_indices = @transform_7, window_bounds = array<i64: 1, 256, 128>}]} {
    %c0 = arith.constant 0 : index
    %c0_0 = arith.constant 0 : index
    %c0_1 = arith.constant 0 : index
    %0 = vector.load %arg1[%c0, %c0_0, %c0_1] : memref<1x256x128xf32, #tpu.memory_space<vmem>>, vector<1x256x128xf32>
    %1 = vector.shape_cast %0 : vector<1x256x128xf32> to vector<256x128xf32>
    %2 = arith.truncf %1 : vector<256x128xf32> to vector<256x128xbf16>
    %c0_2 = arith.constant 0 : index
    %c0_3 = arith.constant 0 : index
    %3 = vector.load %arg2[%c0_2, %c0_3] : memref<128x32xbf16, #tpu.memory_space<vmem>>, vector<128x32xbf16>
    %cst = arith.constant dense<0.000000e+00> : vector<256x32xf32>
    %4 = tpu.matmul %2, %3, %cst {dimension_numbers = #tpu.dot_dimension_numbers<[1], [0], [0], [1], [0, 0, 1, 1], [], []>} : vector<256x128xbf16>, vector<128x32xbf16>, vector<256x32xf32> -> vector<256x32xf32>
    %c0_4 = arith.constant 0 : index
    %c0_5 = arith.constant 0 : index
    %5 = vector.load %arg5[%c0_4, %c0_5] : memref<1x32xf32, #tpu.memory_space<vmem>>, vector<1x32xf32>
    %6 = vector.broadcast %5 : vector<1x32xf32> to vector<256x32xf32>
    %7 = arith.addf %4, %6 : vector<256x32xf32>
    %cst_6 = arith.constant 0.000000e+00 : f32
    %8 = vector.broadcast %cst_6 : f32 to vector<256x32xf32>
    %9 = arith.maximumf %7, %8 : vector<256x32xf32>
    %cst_7 = arith.constant 0.000000e+00 : f32
    %10 = vector.broadcast %cst_7 : f32 to vector<24x32xf32>
    %c0_8 = arith.constant 0 : index
    %c0_9 = arith.constant 0 : index
    %11 = vector.load %arg9[%c0_8, %c0_9] : memref<304x32xf32, #tpu.memory_space<vmem>>, vector<24x32xf32>
    tpu.vector_store %arg9[%c0_8, %c0_9], %10 {strides = array<i32>} : memref<304x32xf32, #tpu.memory_space<vmem>>, vector<24x32xf32>,
    %c280 = arith.constant 280 : index
    %c0_10 = arith.constant 0 : index
    %12 = vector.load %arg9[%c280, %c0_10] : memref<304x32xf32, #tpu.memory_space<vmem>>, vector<24x32xf32>
    tpu.vector_store %arg9[%c280, %c0_10], %10 {strides = array<i32>} : memref<304x32xf32, #tpu.memory_space<vmem>>, vector<24x32xf32>,
    %c24 = arith.constant 24 : index
    %c0_11 = arith.constant 0 : index
    %13 = vector.load %arg9[%c24, %c0_11] : memref<304x32xf32, #tpu.memory_space<vmem>>, vector<256x32xf32>
    tpu.vector_store %arg9[%c24, %c0_11], %9 {strides = array<i32>} : memref<304x32xf32, #tpu.memory_space<vmem>>, vector<256x32xf32>,
    %14 = tpu.iota {dimensions = array<i32: 0>} : vector<256x1xi32>
    %c16_i32 = arith.constant 16 : i32
    %c0_i32 = arith.constant 0 : i32
    %15 = arith.cmpi eq, %c16_i32, %c0_i32 : i32
    %c1_i32 = arith.constant 1 : i32
    %16 = arith.select %15, %c1_i32, %c16_i32 : i32
    %17 = vector.broadcast %16 : i32 to vector<256x1xi32>
    %18 = arith.remsi %14, %17 : vector<256x1xi32>
    %c0_i32_12 = arith.constant 0 : i32
    %19 = vector.broadcast %c0_i32_12 : i32 to vector<256x1xi32>
    %20 = arith.cmpi ne, %18, %19 : vector<256x1xi32>
    %c0_i32_13 = arith.constant 0 : i32
    %21 = vector.broadcast %c0_i32_13 : i32 to vector<256x1xi32>
    %22 = arith.cmpi slt, %18, %21 : vector<256x1xi32>
    %c0_i32_14 = arith.constant 0 : i32
    %23 = arith.cmpi slt, %16, %c0_i32_14 : i32
    %24 = vector.broadcast %23 : i1 to vector<256x1xi1>
    %25 = vector.broadcast %24 : vector<256x1xi1> to vector<256x1xi1>
    %26 = arith.xori %22, %25 : vector<256x1xi1>
    %27 = arith.andi %26, %20 : vector<256x1xi1>
    %28 = vector.broadcast %16 : i32 to vector<256x1xi32>
    %29 = arith.addi %18, %28 : vector<256x1xi32>
    %30 = arith.select %27, %29, %18 : vector<256x1xi1>, vector<256x1xi32>
    %cst_15 = arith.constant 0.000000e+00 : f32
    %31 = vector.broadcast %cst_15 : f32 to vector<256x32xf32>
    %c7 = arith.constant 7 : index
    %c0_16 = arith.constant 0 : index
    %32 = vector.load %arg9[%c7, %c0_16] : memref<304x32xf32, #tpu.memory_space<vmem>>, vector<256x32xf32>
    %c0_i32_17 = arith.constant 0 : i32
    %33 = vector.broadcast %c0_i32_17 : i32 to vector<256x1xi32>
    %34 = arith.cmpi sgt, %30, %33 : vector<256x1xi32>
    %cst_18 = arith.constant 0.000000e+00 : f32
    %35 = vector.shape_cast %34 : vector<256x1xi1> to vector<256x1xi1>
    %36 = vector.broadcast %35 : vector<256x1xi1> to vector<256x32xi1>
    %37 = vector.broadcast %cst_18 : f32 to vector<256x32xf32>
    %38 = arith.select %36, %32, %37 : vector<256x32xi1>, vector<256x32xf32>
    %39 = arith.truncf %38 : vector<256x32xf32> to vector<256x32xbf16>
    %c0_19 = arith.constant 0 : index
    %c0_20 = arith.constant 0 : index
    %c0_21 = arith.constant 0 : index
    %40 = vector.load %arg3[%c0_19, %c0_20, %c0_21] : memref<9x32x32xbf16, #tpu.memory_space<vmem>>, vector<1x32x32xbf16>
    %41 = vector.shape_cast %40 : vector<1x32x32xbf16> to vector<32x32xbf16>
    %cst_22 = arith.constant dense<0.000000e+00> : vector<256x32xf32>
    %42 = tpu.matmul %39, %41, %cst_22 {dimension_numbers = #tpu.dot_dimension_numbers<[1], [0], [0], [1], [0, 0, 1, 1], [], []>} : vector<256x32xbf16>, vector<32x32xbf16>, vector<256x32xf32> -> vector<256x32xf32>
    %43 = arith.addf %31, %42 : vector<256x32xf32>
    %c8 = arith.constant 8 : index
    %c0_23 = arith.constant 0 : index
    %44 = vector.load %arg9[%c8, %c0_23] : memref<304x32xf32, #tpu.memory_space<vmem>>, vector<256x32xf32>
    %45 = arith.truncf %44 : vector<256x32xf32> to vector<256x32xbf16>
    %c1 = arith.constant 1 : index
    %c0_24 = arith.constant 0 : index
    %c0_25 = arith.constant 0 : index
    %46 = vector.load %arg3[%c1, %c0_24, %c0_25] : memref<9x32x32xbf16, #tpu.memory_space<vmem>>, vector<1x32x32xbf16>
    %47 = vector.shape_cast %46 : vector<1x32x32xbf16> to vector<32x32xbf16>
    %cst_26 = arith.constant dense<0.000000e+00> : vector<256x32xf32>
    %48 = tpu.matmul %45, %47, %cst_26 {dimension_numbers = #tpu.dot_dimension_numbers<[1], [0], [0], [1], [0, 0, 1, 1], [], []>} : vector<256x32xbf16>, vector<32x32xbf16>, vector<256x32xf32> -> vector<256x32xf32>
    %49 = arith.addf %43, %48 : vector<256x32xf32>
    %c9 = arith.constant 9 : index
    %c0_27 = arith.constant 0 : index
    %50 = vector.load %arg9[%c9, %c0_27] : memref<304x32xf32, #tpu.memory_space<vmem>>, vector<256x32xf32>
    %c15_i32 = arith.constant 15 : i32
    %51 = vector.broadcast %c15_i32 : i32 to vector<256x1xi32>
    %52 = arith.cmpi slt, %30, %51 : vector<256x1xi32>
    %cst_28 = arith.constant 0.000000e+00 : f32
    %53 = vector.shape_cast %52 : vector<256x1xi1> to vector<256x1xi1>
    %54 = vector.broadcast %53 : vector<256x1xi1> to vector<256x32xi1>
    %55 = vector.broadcast %cst_28 : f32 to vector<256x32xf32>
    %56 = arith.select %54, %50, %55 : vector<256x32xi1>, vector<256x32xf32>
    %57 = arith.truncf %56 : vector<256x32xf32> to vector<256x32xbf16>
    %c2 = arith.constant 2 : index
    %c0_29 = arith.constant 0 : index
    %c0_30 = arith.constant 0 : index
    %58 = vector.load %arg3[%c2, %c0_29, %c0_30] : memref<9x32x32xbf16, #tpu.memory_space<vmem>>, vector<1x32x32xbf16>
    %59 = vector.shape_cast %58 : vector<1x32x32xbf16> to vector<32x32xbf16>
    %cst_31 = arith.constant dense<0.000000e+00> : vector<256x32xf32>
    %60 = tpu.matmul %57, %59, %cst_31 {dimension_numbers = #tpu.dot_dimension_numbers<[1], [0], [0], [1], [0, 0, 1, 1], [], []>} : vector<256x32xbf16>, vector<32x32xbf16>, vector<256x32xf32> -> vector<256x32xf32>
    %61 = arith.addf %49, %60 : vector<256x32xf32>
    %c23 = arith.constant 23 : index
    %c0_32 = arith.constant 0 : index
    %62 = vector.load %arg9[%c23, %c0_32] : memref<304x32xf32, #tpu.memory_space<vmem>>, vector<256x32xf32>
    %c0_i32_33 = arith.constant 0 : i32
    %63 = vector.broadcast %c0_i32_33 : i32 to vector<256x1xi32>
    %64 = arith.cmpi sgt, %30, %63 : vector<256x1xi32>
    %cst_34 = arith.constant 0.000000e+00 : f32
    %65 = vector.shape_cast %64 : vector<256x1xi1> to vector<256x1xi1>
    %66 = vector.broadcast %65 : vector<256x1xi1> to vector<256x32xi1>
    %67 = vector.broadcast %cst_34 : f32 to vector<256x32xf32>
    %68 = arith.select %66, %62, %67 : vector<256x32xi1>, vector<256x32xf32>
    %69 = arith.truncf %68 : vector<256x32xf32> to vector<256x32xbf16>
    %c3 = arith.constant 3 : index
    %c0_35 = arith.constant 0 : index
    %c0_36 = arith.constant 0 : index
    %70 = vector.load %arg3[%c3, %c0_35, %c0_36] : memref<9x32x32xbf16, #tpu.memory_space<vmem>>, vector<1x32x32xbf16>
    %71 = vector.shape_cast %70 : vector<1x32x32xbf16> to vector<32x32xbf16>
    %cst_37 = arith.constant dense<0.000000e+00> : vector<256x32xf32>
    %72 = tpu.matmul %69, %71, %cst_37 {dimension_numbers = #tpu.dot_dimension_numbers<[1], [0], [0], [1], [0, 0, 1, 1], [], []>} : vector<256x32xbf16>, vector<32x32xbf16>, vector<256x32xf32> -> vector<256x32xf32>
    %73 = arith.addf %61, %72 : vector<256x32xf32>
    %c24_38 = arith.constant 24 : index
    %c0_39 = arith.constant 0 : index
    %74 = vector.load %arg9[%c24_38, %c0_39] : memref<304x32xf32, #tpu.memory_space<vmem>>, vector<256x32xf32>
    %75 = arith.truncf %74 : vector<256x32xf32> to vector<256x32xbf16>
    %c4 = arith.constant 4 : index
    %c0_40 = arith.constant 0 : index
    %c0_41 = arith.constant 0 : index
    %76 = vector.load %arg3[%c4, %c0_40, %c0_41] : memref<9x32x32xbf16, #tpu.memory_space<vmem>>, vector<1x32x32xbf16>
    %77 = vector.shape_cast %76 : vector<1x32x32xbf16> to vector<32x32xbf16>
    %cst_42 = arith.constant dense<0.000000e+00> : vector<256x32xf32>
    %78 = tpu.matmul %75, %77, %cst_42 {dimension_numbers = #tpu.dot_dimension_numbers<[1], [0], [0], [1], [0, 0, 1, 1], [], []>} : vector<256x32xbf16>, vector<32x32xbf16>, vector<256x32xf32> -> vector<256x32xf32>
    %79 = arith.addf %73, %78 : vector<256x32xf32>
    %c25 = arith.constant 25 : index
    %c0_43 = arith.constant 0 : index
    %80 = vector.load %arg9[%c25, %c0_43] : memref<304x32xf32, #tpu.memory_space<vmem>>, vector<256x32xf32>
    %c15_i32_44 = arith.constant 15 : i32
    %81 = vector.broadcast %c15_i32_44 : i32 to vector<256x1xi32>
    %82 = arith.cmpi slt, %30, %81 : vector<256x1xi32>
    %cst_45 = arith.constant 0.000000e+00 : f32
    %83 = vector.shape_cast %82 : vector<256x1xi1> to vector<256x1xi1>
    %84 = vector.broadcast %83 : vector<256x1xi1> to vector<256x32xi1>
    %85 = vector.broadcast %cst_45 : f32 to vector<256x32xf32>
    %86 = arith.select %84, %80, %85 : vector<256x32xi1>, vector<256x32xf32>
    %87 = arith.truncf %86 : vector<256x32xf32> to vector<256x32xbf16>
    %c5 = arith.constant 5 : index
    %c0_46 = arith.constant 0 : index
    %c0_47 = arith.constant 0 : index
    %88 = vector.load %arg3[%c5, %c0_46, %c0_47] : memref<9x32x32xbf16, #tpu.memory_space<vmem>>, vector<1x32x32xbf16>
    %89 = vector.shape_cast %88 : vector<1x32x32xbf16> to vector<32x32xbf16>
    %cst_48 = arith.constant dense<0.000000e+00> : vector<256x32xf32>
    %90 = tpu.matmul %87, %89, %cst_48 {dimension_numbers = #tpu.dot_dimension_numbers<[1], [0], [0], [1], [0, 0, 1, 1], [], []>} : vector<256x32xbf16>, vector<32x32xbf16>, vector<256x32xf32> -> vector<256x32xf32>
    %91 = arith.addf %79, %90 : vector<256x32xf32>
    %c39 = arith.constant 39 : index
    %c0_49 = arith.constant 0 : index
    %92 = vector.load %arg9[%c39, %c0_49] : memref<304x32xf32, #tpu.memory_space<vmem>>, vector<256x32xf32>
    %c0_i32_50 = arith.constant 0 : i32
    %93 = vector.broadcast %c0_i32_50 : i32 to vector<256x1xi32>
    %94 = arith.cmpi sgt, %30, %93 : vector<256x1xi32>
    %cst_51 = arith.constant 0.000000e+00 : f32
    %95 = vector.shape_cast %94 : vector<256x1xi1> to vector<256x1xi1>
    %96 = vector.broadcast %95 : vector<256x1xi1> to vector<256x32xi1>
    %97 = vector.broadcast %cst_51 : f32 to vector<256x32xf32>
    %98 = arith.select %96, %92, %97 : vector<256x32xi1>, vector<256x32xf32>
    %99 = arith.truncf %98 : vector<256x32xf32> to vector<256x32xbf16>
    %c6 = arith.constant 6 : index
    %c0_52 = arith.constant 0 : index
    %c0_53 = arith.constant 0 : index
    %100 = vector.load %arg3[%c6, %c0_52, %c0_53] : memref<9x32x32xbf16, #tpu.memory_space<vmem>>, vector<1x32x32xbf16>
    %101 = vector.shape_cast %100 : vector<1x32x32xbf16> to vector<32x32xbf16>
    %cst_54 = arith.constant dense<0.000000e+00> : vector<256x32xf32>
    %102 = tpu.matmul %99, %101, %cst_54 {dimension_numbers = #tpu.dot_dimension_numbers<[1], [0], [0], [1], [0, 0, 1, 1], [], []>} : vector<256x32xbf16>, vector<32x32xbf16>, vector<256x32xf32> -> vector<256x32xf32>
    %103 = arith.addf %91, %102 : vector<256x32xf32>
    %c40 = arith.constant 40 : index
    %c0_55 = arith.constant 0 : index
    %104 = vector.load %arg9[%c40, %c0_55] : memref<304x32xf32, #tpu.memory_space<vmem>>, vector<256x32xf32>
    %105 = arith.truncf %104 : vector<256x32xf32> to vector<256x32xbf16>
    %c7_56 = arith.constant 7 : index
    %c0_57 = arith.constant 0 : index
    %c0_58 = arith.constant 0 : index
    %106 = vector.load %arg3[%c7_56, %c0_57, %c0_58] : memref<9x32x32xbf16, #tpu.memory_space<vmem>>, vector<1x32x32xbf16>
    %107 = vector.shape_cast %106 : vector<1x32x32xbf16> to vector<32x32xbf16>
    %cst_59 = arith.constant dense<0.000000e+00> : vector<256x32xf32>
    %108 = tpu.matmul %105, %107, %cst_59 {dimension_numbers = #tpu.dot_dimension_numbers<[1], [0], [0], [1], [0, 0, 1, 1], [], []>} : vector<256x32xbf16>, vector<32x32xbf16>, vector<256x32xf32> -> vector<256x32xf32>
    %109 = arith.addf %103, %108 : vector<256x32xf32>
    %c41 = arith.constant 41 : index
    %c0_60 = arith.constant 0 : index
    %110 = vector.load %arg9[%c41, %c0_60] : memref<304x32xf32, #tpu.memory_space<vmem>>, vector<256x32xf32>
    %c15_i32_61 = arith.constant 15 : i32
    %111 = vector.broadcast %c15_i32_61 : i32 to vector<256x1xi32>
    %112 = arith.cmpi slt, %30, %111 : vector<256x1xi32>
    %cst_62 = arith.constant 0.000000e+00 : f32
    %113 = vector.shape_cast %112 : vector<256x1xi1> to vector<256x1xi1>
    %114 = vector.broadcast %113 : vector<256x1xi1> to vector<256x32xi1>
    %115 = vector.broadcast %cst_62 : f32 to vector<256x32xf32>
    %116 = arith.select %114, %110, %115 : vector<256x32xi1>, vector<256x32xf32>
    %117 = arith.truncf %116 : vector<256x32xf32> to vector<256x32xbf16>
    %c8_63 = arith.constant 8 : index
    %c0_64 = arith.constant 0 : index
    %c0_65 = arith.constant 0 : index
    %118 = vector.load %arg3[%c8_63, %c0_64, %c0_65] : memref<9x32x32xbf16, #tpu.memory_space<vmem>>, vector<1x32x32xbf16>
    %119 = vector.shape_cast %118 : vector<1x32x32xbf16> to vector<32x32xbf16>
    %cst_66 = arith.constant dense<0.000000e+00> : vector<256x32xf32>
    %120 = tpu.matmul %117, %119, %cst_66 {dimension_numbers = #tpu.dot_dimension_numbers<[1], [0], [0], [1], [0, 0, 1, 1], [], []>} : vector<256x32xbf16>, vector<32x32xbf16>, vector<256x32xf32> -> vector<256x32xf32>
    %121 = arith.addf %109, %120 : vector<256x32xf32>
    %c0_67 = arith.constant 0 : index
    %c0_68 = arith.constant 0 : index
    %122 = vector.load %arg6[%c0_67, %c0_68] : memref<1x32xf32, #tpu.memory_space<vmem>>, vector<1x32xf32>
    %123 = vector.broadcast %122 : vector<1x32xf32> to vector<256x32xf32>
    %124 = arith.addf %121, %123 : vector<256x32xf32>
    %cst_69 = arith.constant 0.000000e+00 : f32
    %125 = vector.broadcast %cst_69 : f32 to vector<256x32xf32>
    %126 = arith.maximumf %124, %125 : vector<256x32xf32>
    %127 = arith.truncf %126 : vector<256x32xf32> to vector<256x32xbf16>
    %c0_70 = arith.constant 0 : index
    %c0_71 = arith.constant 0 : index
    %128 = vector.load %arg4[%c0_70, %c0_71] : memref<32x128xbf16, #tpu.memory_space<vmem>>, vector<32x128xbf16>
    %cst_72 = arith.constant dense<0.000000e+00> : vector<256x128xf32>
    %129 = tpu.matmul %127, %128, %cst_72 {dimension_numbers = #tpu.dot_dimension_numbers<[1], [0], [0], [1], [0, 0, 1, 1], [], []>} : vector<256x32xbf16>, vector<32x128xbf16>, vector<256x128xf32> -> vector<256x128xf32>
    %c0_73 = arith.constant 0 : index
    %c0_74 = arith.constant 0 : index
    %130 = vector.load %arg7[%c0_73, %c0_74] : memref<1x128xf32, #tpu.memory_space<vmem>>, vector<1x128xf32>
    %131 = vector.broadcast %130 : vector<1x128xf32> to vector<256x128xf32>
    %132 = arith.addf %129, %131 : vector<256x128xf32>
    %c0_75 = arith.constant 0 : index
    %c0_76 = arith.constant 0 : index
    %c0_77 = arith.constant 0 : index
    %133 = vector.load %arg1[%c0_75, %c0_76, %c0_77] : memref<1x256x128xf32, #tpu.memory_space<vmem>>, vector<1x256x128xf32>
    %134 = vector.shape_cast %133 : vector<1x256x128xf32> to vector<256x128xf32>
    %135 = arith.addf %132, %134 : vector<256x128xf32>
    %cst_78 = arith.constant 0.000000e+00 : f32
    %136 = vector.broadcast %cst_78 : f32 to vector<256x128xf32>
    %137 = arith.maximumf %135, %136 : vector<256x128xf32>
    %c0_79 = arith.constant 0 : index
    %c0_80 = arith.constant 0 : index
    %c0_81 = arith.constant 0 : index
    %138 = vector.load %arg8[%c0_79, %c0_80, %c0_81] : memref<1x256x128xf32, #tpu.memory_space<vmem>>, vector<1x256x128xf32>
    %139 = vector.shape_cast %138 : vector<1x256x128xf32> to vector<256x128xf32>
    %140 = vector.shape_cast %137 : vector<256x128xf32> to vector<1x256x128xf32>
    tpu.vector_store %arg8[%c0_79, %c0_80, %c0_81], %140 {strides = array<i32>} : memref<1x256x128xf32, #tpu.memory_space<vmem>>, vector<1x256x128xf32>,
    return
  }
  func.func @transform_0(%arg0: i32) -> (i32, i32, i32) {
    %c0_i32 = arith.constant 0 : i32
    %c0_i32_0 = arith.constant 0 : i32
    %c0_i32_1 = arith.constant 0 : i32
    return %arg0, %c0_i32, %c0_i32_0 : i32, i32, i32
  }
  func.func @transform_1(%arg0: i32) -> (i32, i32) {
    %c0_i32 = arith.constant 0 : i32
    %c0_i32_0 = arith.constant 0 : i32
    %c0_i32_1 = arith.constant 0 : i32
    return %c0_i32, %c0_i32_0 : i32, i32
  }
  func.func @transform_2(%arg0: i32) -> (i32, i32, i32) {
    %c0_i32 = arith.constant 0 : i32
    %c0_i32_0 = arith.constant 0 : i32
    %c0_i32_1 = arith.constant 0 : i32
    %c0_i32_2 = arith.constant 0 : i32
    return %c0_i32, %c0_i32_0, %c0_i32_1 : i32, i32, i32
  }
  func.func @transform_3(%arg0: i32) -> (i32, i32) {
    %c0_i32 = arith.constant 0 : i32
    %c0_i32_0 = arith.constant 0 : i32
    %c0_i32_1 = arith.constant 0 : i32
    return %c0_i32, %c0_i32_0 : i32, i32
  }
  func.func @transform_4(%arg0: i32) -> (i32, i32) {
    %c0_i32 = arith.constant 0 : i32
    %c0_i32_0 = arith.constant 0 : i32
    %c0_i32_1 = arith.constant 0 : i32
    return %c0_i32, %c0_i32_0 : i32, i32
  }
  func.func @transform_5(%arg0: i32) -> (i32, i32) {
    %c0_i32 = arith.constant 0 : i32
    %c0_i32_0 = arith.constant 0 : i32
    %c0_i32_1 = arith.constant 0 : i32
    return %c0_i32, %c0_i32_0 : i32, i32
  }
  func.func @transform_6(%arg0: i32) -> (i32, i32) {
    %c0_i32 = arith.constant 0 : i32
    %c0_i32_0 = arith.constant 0 : i32
    %c0_i32_1 = arith.constant 0 : i32
    return %c0_i32, %c0_i32_0 : i32, i32
  }
  func.func @transform_7(%arg0: i32) -> (i32, i32, i32) {
    %c0_i32 = arith.constant 0 : i32
    %c0_i32_0 = arith.constant 0 : i32
    %c0_i32_1 = arith.constant 0 : i32
    return %arg0, %c0_i32, %c0_i32_0 : i32, i32, i32
  }
}

</mosaic_0001>

<bundles_post_ra>
// kernel: bottleneck_forward.1
= control target key start
LH: loop header
LB: loop body
LE: loop exit
PB: predicated region body
PF: predicated region fallthrough
CT: control target
= control target key end

     0   :  { %12 = vsyncpa [#allocation4], 0  ;;  %s7406_s0 = inlined_call_operand.vmem [shape: f32[2,256,128], index: 0, kind: input, shape index: {}]   ;;  %s7407_s1 = inlined_call_operand.vmem [shape: bf16[128,32], index: 1, kind: input, shape index: {}]   ;;  %s7408_s2 = inlined_call_operand.vmem [shape: bf16[9,32,32], index: 2, kind: input, shape index: {}]   ;;  %s7409_s3 = inlined_call_operand.vmem [shape: bf16[32,128], index: 3, kind: input, shape index: {}]   ;;  %s7410_s4 = inlined_call_operand.vmem [shape: f32[1,32], index: 4, kind: input, shape index: {}]   ;;  %s7411_s5 = inlined_call_operand.vmem [shape: f32[1,32], index: 5, kind: input, shape index: {}]   ;;  %s7412_s6 = inlined_call_operand.vmem [shape: f32[1,128], index: 6, kind: input, shape index: {}]   ;;  %s7413_s7 = inlined_call_operand.hbm [shape: f32[2,256,128], index: 7, kind: output, shape index: {}]  }
   0x1   :  { %14 = vsyncpa [#allocation4 + $0x1], 0  ;;  %s5931_s24 = smov 0   ;;  %s5933_s25 = smov 0  }
   0x2   :  { %s5935_s26 = smov 0   ;;  %s5937_s27 = smov 0  }
   0x3 LB: > { %s5952_s28 = sadd.s32 4294967295, %s5885_s27   ;;  %s4642_s29 = sadd.s32 4294967294, %s5885_s27   ;;  %s5885_s27 = sphi %s5937_s27, %s7818_s27   ;;  %s5881_s26 = sphi %s5935_s26, %s7817_s26   ;;  %s5877_s25 = sphi %s5933_s25, %s7816_s25   ;;  %s5873_s24 = sphi %s5931_s24, %s7815_s24  }
   0x4   : > { %s5956_s30 = sadd.s32 1, %s5885_s27   ;;  %s179_s8 = sadd.s32 1, %s5881_s26 }
   0x5   : > { %s176_s9 = ssub.s32 %s5885_s27, %s5956_s30  ;;  %p189_p0 = scmp.ne.s32.totalorder %s5881_s26, %s5877_s25 }
   0x6   : > { %p177_p1 = scmp.eq.s32.totalorder %s176_s9, 0  ;;  %p190_p2 = scmp.eq.s32.totalorder %s5952_s28, 1 }
   0x7   : > { %p195_p3 = scmp.ne.s32.totalorder %s5877_s25, %s5873_s24  ;;  %p196_p4 = scmp.eq.s32.totalorder %s4642_s29, 1 }
   0x8   : > { %s5967_s10 = scalar_select %p177_p1, %s5881_s26, %s179_s8  }
   0x9   : > { %p5969_p5 = por %p190_p2, %p189_p0  ;;  %p5973_p6 = por %p196_p4, %p195_p3 }
   0xa   : > { %p4645_p7 = scmp.ge.s32.totalorder %s5885_s27, 1  ;;  %p240_p8 = scmp.lt.s32.totalorder %s5885_s27, 3 }
   0xc   : > { %p241_p9 = pnand %p4645_p7, %p240_p8 }
   0xe   : > { %244 = sbr.rel (%p241_p9) target bundleno = 1129 (0x469), region = 48 }
  0x15   : > { %v5793_v0 = vld [vmem:[%s7407_s1] sm:$0xff]   ;;  %p272_p10 = scmp.lt.s32.totalorder %s5952_s28, 1  ;;  %v5794_v1 = vld [vmem:[%s7407_s1 + $0x8] sm:$0xff]   ;;  %v5795_v2 = vld [vmem:[%s7407_s1 + $0x10] sm:$0xff]   ;;  %vm7429_vm0 = vcmask 261120   ;;  %v5887_v56 = vmov 0.0  }
  0x16   : > { %5083 = vmatprep.subr.bf16.mxu0 %v5793_v0  ;;  %v5796_v3 = vld [vmem:[%s7407_s1 + $0x18] sm:$0xff]   ;;  %v5797_v7 = vld [vmem:[%s7407_s1 + $0x20] sm:$0xff]   ;;  %v5798_v8 = vld [vmem:[%s7407_s1 + $0x28] sm:$0xff]   ;;  %592 = vst.msk [vmem:[#allocation2 + $0x8] sm:$0xff] %vm7429_vm0, %v5887_v56  ;;  %s269_s16 = sand.u32 1, %s5877_s25   ;;  %s4878_s21 = sshll.u32 %s5952_s28, 12 }
  0x17   : > { %s273_s17 = scalar_select %p272_p10, %s5952_s28, 1  ;;  %5084 = vmatpush3.bf16.msra.mxu0 %v5793_v0  ;;  %v5799_v9 = vld [vmem:[%s7407_s1 + $0x30] sm:$0xff]   ;;  %v5800_v10 = vld [vmem:[%s7407_s1 + $0x38] sm:$0xff]   ;;  %593 = vst.msk [vmem:[#allocation2 + $0x10] sm:$0xff] %vm7429_vm0, %v5887_v56  ;;  %591 = vst.msk [vmem:[#allocation2] sm:$0xff] %vm7429_vm0, %v5887_v56 }
  0x18   : > { %5085 = vmatprep.subr.bf16.mxu0 %v5794_v1  ;;  %594 = vst.msk [vmem:[#allocation2 + $0x118] sm:$0xff] %vm7429_vm0, %v5887_v56  ;;  %595 = vst.msk [vmem:[#allocation2 + $0x120] sm:$0xff] %vm7429_vm0, %v5887_v56  ;;  %v5801_v57 = vld [vmem:[%s7408_s2 + $0x10] sm:$0xff]   ;;  %v5802_v58 = vld [vmem:[%s7408_s2 + $0x18] sm:$0xff]   ;;  %s4646_s19 = sshll.u32 %s269_s16, 8  ;;  %s7356_s9 = scalar_lea.hbm %s7413_s7, %s4878_s21 }
  0x19   : > { %s4877_s20 = sshll.u32 %s273_s17, 8  ;;  %596 = vst.msk [vmem:[#allocation2 + $0x128] sm:$0xff] %vm7429_vm0, %v5887_v56  ;;  %v6058_v62 = vld [vmem:[%s7408_s2 + $0x30] sm:$0xff]   ;;  %v5804_v63 = vld [vmem:[%s7408_s2 + $0x38] sm:$0xff]   ;;  %v6068_v0 = vld [vmem:[%s7408_s2 + $0x40] sm:$0xff]   ;;  %s7365_s28 = scalar_lea.sflag [#allocation4], %s269_s16 }
  0x1a   : > { %s5993_s23 = scalar_lea.vmem %s7406_s0, %s4877_s20  ;;  %5491 = vmatprep.subr.bf16.mxu1 %v6058_v62  ;;  %s7264_s20 = scalar_lea.vmem [#allocation3], %s4646_s19 }
  0x1b   : > { %5086 = vmatpush3.bf16.msra.mxu0 %v5794_v1  ;;  %v278_v4 = vld [vmem:[%s5993_s23] sm:$0xff]  ;;  %v279_v5 = vld [vmem:[%s5993_s23 + $0x8] sm:$0xff]  ;;  %v280_v11 = vld [vmem:[%s5993_s23 + $0x10] sm:$0xff]  ;;  %5493 = vmatpush3.bf16.msra.mxu1 %v6058_v62  ;;  %s4580_s22 = sshll.u32 %s7264_s20, 4  ;;  %s5888_s13 = smov [#allocation3]   ;;  %s7358_s22 = int_to_ptr.vmem [resolvable:$true] %s4580_s22 }
  0x1c   : > { %5087 = vmatprep.subr.bf16.mxu0 %v5795_v2  ;;  %v310_v6 = vpack.c.bf16 %v279_v5, %v278_v4  ;;  %v281_v12 = vld [vmem:[%s5993_s23 + $0x18] sm:$0xff]  ;;  %v282_v13 = vld [vmem:[%s5993_s23 + $0x20] sm:$0xff]  ;;  %v283_v14 = vld [vmem:[%s5993_s23 + $0x28] sm:$0xff]  ;;  %5492 = vmatprep.subr.bf16.mxu1 %v5804_v63  ;;  %s5827_s14 = sshll.u32 %s5888_s13, 4  ;;  %s5828_s14 = int_to_ptr.vmem [resolvable:$false] %s5827_s14 }
  0x1d   : > { %v311_v15 = vpack.c.bf16 %v281_v12, %v280_v11  ;;  %v312_v16 = vpack.c.bf16 %v283_v14, %v282_v13  ;;  %v284_v17 = vld [vmem:[%s5993_s23 + $0x30] sm:$0xff]  ;;  %v285_v18 = vld [vmem:[%s5993_s23 + $0x38] sm:$0xff]  ;;  %v286_v19 = vld [vmem:[%s5993_s23 + $0x40] sm:$0xff]  ;;  %s5829_s15 = scalar_lea.vmem %s5828_s14, 8192  ;;  %p5830_p0 = scmp.lt.s32.totalorder %s7358_s22, %s5828_s14 }
  0x1e   : > { %5099 = vmatprep.mubr.bf16.mxu0 %v310_v6  ;;  %v287_v20 = vld [vmem:[%s5993_s23 + $0x48] sm:$0xff]  ;;  %v313_v21 = vpack.c.bf16 %v285_v18, %v284_v17  ;;  %v288_v23 = vld [vmem:[%s5993_s23 + $0x50] sm:$0xff]  ;;  %v289_v24 = vld [vmem:[%s5993_s23 + $0x58] sm:$0xff]  ;;  %v629_v6 = vlaneseq }
  0x1f   : > { %5088 = vmatpush3.bf16.msra.mxu0 %v5795_v2  ;;  %v314_v22 = vpack.c.bf16 %v287_v20, %v286_v19  ;;  %v290_v25 = vld [vmem:[%s5993_s23 + $0x60] sm:$0xff]  ;;  %v291_v26 = vld [vmem:[%s5993_s23 + $0x68] sm:$0xff]  ;;  %v315_v27 = vpack.c.bf16 %v289_v24, %v288_v23  ;;  %v292_v29 = vld [vmem:[%s5993_s23 + $0x70] sm:$0xff]  ;;  %5494 = vmatpush3.bf16.msra.mxu1 %v5804_v63 }
  0x20   : > { %5089 = vmatprep.subr.bf16.mxu0 %v5796_v3  ;;  %v316_v28 = vpack.c.bf16 %v291_v26, %v290_v25  ;;  %v293_v30 = vld [vmem:[%s5993_s23 + $0x78] sm:$0xff]  ;;  %v294_v31 = vld [vmem:[%s5993_s23 + $0x80] sm:$0xff]  ;;  %v295_v32 = vld [vmem:[%s5993_s23 + $0x88] sm:$0xff]  ;;  %5275 = vmatprep.subr.bf16.mxu1 %v6068_v0 }
  0x21   : > { %v317_v33 = vpack.c.bf16 %v293_v30, %v292_v29  ;;  %v318_v34 = vpack.c.bf16 %v295_v32, %v294_v31  ;;  %v296_v35 = vld [vmem:[%s5993_s23 + $0x90] sm:$0xff]  ;;  %v297_v36 = vld [vmem:[%s5993_s23 + $0x98] sm:$0xff]  ;;  %v298_v37 = vld [vmem:[%s5993_s23 + $0xa0] sm:$0xff] }
  0x22   : > { %v299_v38 = vld [vmem:[%s5993_s23 + $0xa8] sm:$0xff]  ;;  %v319_v39 = vpack.c.bf16 %v297_v36, %v296_v35  ;;  %v300_v41 = vld [vmem:[%s5993_s23 + $0xb0] sm:$0xff]  ;;  %v301_v42 = vld [vmem:[%s5993_s23 + $0xb8] sm:$0xff] }
  0x23   : > { %5090 = vmatpush3.bf16.msra.mxu0 %v5796_v3  ;;  %v320_v40 = vpack.c.bf16 %v299_v38, %v298_v37  ;;  %v302_v43 = vld [vmem:[%s5993_s23 + $0xc0] sm:$0xff]  ;;  %v303_v44 = vld [vmem:[%s5993_s23 + $0xc8] sm:$0xff]  ;;  %v321_v45 = vpack.c.bf16 %v301_v42, %v300_v41  ;;  %v304_v47 = vld [vmem:[%s5993_s23 + $0xd0] sm:$0xff] }
  0x24   : > { %5091 = vmatprep.subr.bf16.mxu0 %v5797_v7  ;;  %v322_v46 = vpack.c.bf16 %v303_v44, %v302_v43  ;;  %v305_v48 = vld [vmem:[%s5993_s23 + $0xd8] sm:$0xff]  ;;  %v306_v49 = vld [vmem:[%s5993_s23 + $0xe0] sm:$0xff]  ;;  %v307_v50 = vld [vmem:[%s5993_s23 + $0xe8] sm:$0xff] }
  0x25   : > { %v323_v51 = vpack.c.bf16 %v305_v48, %v304_v47  ;;  %v324_v52 = vpack.c.bf16 %v307_v50, %v306_v49  ;;  %v308_v53 = vld [vmem:[%s5993_s23 + $0xf0] sm:$0xff]  ;;  %v309_v54 = vld [vmem:[%s5993_s23 + $0xf8] sm:$0xff]  ;;  %v1226_v59 = vld [vmem:[#allocation2 + $0x8] sm:$0xff] }
  0x26   : > { %v325_v55 = vpack.c.bf16 %v309_v54, %v308_v53  ;;  %v1227_v60 = vld [vmem:[#allocation2 + $0x10] sm:$0xff]  ;;  %v6074_v1 = vld [vmem:[%s7408_s2] sm:$0xff]   ;;  %v5808_v47 = vld [vmem:[%s7408_s2 + $0x8] sm:$0xff]  }
  0x27   : > { %5092 = vmatpush3.bf16.msra.mxu0 %v5797_v7  ;;  %v1258_v61 = vpack.c.bf16 %v1227_v60, %v1226_v59  ;;  %v6080_v2 = vld [vmem:[%s7410_s4] ss:$0 sm:$0xff] }
  0x28   : > { %5093 = vmatprep.subr.bf16.mxu0 %v5798_v8 }
  0x2b   : > { %5094 = vmatpush3.bf16.msra.mxu0 %v5798_v8 }
  0x2c   : > { %5095 = vmatprep.subr.bf16.mxu0 %v5799_v9 }
  0x2f   : > { %5096 = vmatpush3.bf16.msra.mxu0 %v5799_v9 }
  0x30   : > { %5097 = vmatprep.subr.bf16.mxu0 %v5800_v10 }
  0x33   : > { %5098 = vmatpush3.bf16.msra.mxu0 %v5800_v10 }
  0x34   : > { %5131 = vmatprep.subr.bf16.mxu0 %v5801_v57 }
  0x36   : > { %5100 = vmatmul.mubr.bf16.vlgmr.msra.gmra.mrb[0].mxu0 %v311_v15  ;;  %v6087_v15 = vshrl.u32 %v629_v6, 7 }
  0x37   : > { %5103 = vmatprep.mubr.bf16.mxu0 %v312_v16  ;;  %5132 = vmatpush3.bf16.msra.mxu0 %v5801_v57 }
  0x38   : > { %5133 = vmatprep.subr.bf16.mxu0 %v5802_v58  ;;  %7492 = vst [vmem:[#allocation6_spill] sm:$0xff] %v6087_v15  ;;  %v666_v18 = vand.u32 15, %v6087_v15  ;;  %v6103_v30 = vadd.s32 8, %v6087_v15  ;;  %v636_v38 = vadd.s32 48, %v6087_v15  ;;  %v640_v57 = vadd.s32 80, %v6087_v15 }
  0x3a   : > { %vm6098_vm1 = vcmp.gt.s32.totalorder %v666_v18, 0  ;;  %v673_v48 = vand.u32 15, %v6103_v30  ;;  %v708_v59 = vand.u32 15, %v636_v38 }
  0x3b   : > { %5134 = vmatpush3.bf16.msra.mxu0 %v5802_v58 }
  0x3c   : > { %5167 = vmatprep.subr.bf16.mxu0 %v6074_v1  ;;  %vm6177_vm4 = vcmp.lt.s32.totalorder %v673_v48, 15  ;;  %vm6191_vm6 = vcmp.gt.s32.totalorder %v708_v59, 0 }
  0x3e   : > { %5104 = vmatmul.mubr.bf16.gmra.mrb[4].mxu0 %v313_v21  ;;  %v632_v21 = vadd.s32 16, %v6087_v15 }
  0x3f   : > { %5107 = vmatprep.mubr.bf16.mxu0 %v314_v22 }
  0x40   : > { %v680_v32 = vand.u32 15, %v632_v21  ;;  %v7502_v21 = vmov 0 }
  0x41   : > { %v7503_v21 = vsel %vm6177_vm4, 4294967295, %v7502_v21 }
  0x42   : > { %vm6133_vm2 = vcmp.gt.s32.totalorder %v680_v32, 0  ;;  %7504 = vst [vmem:[#allocation10_spill] sm:$0xff] %v7503_v21 }
  0x46   : > { %5108 = vmatmul.mubr.bf16.gmra.mrb[8].mxu0 %v315_v27 }
  0x47   : > { %5111 = vmatprep.mubr.bf16.mxu0 %v316_v28 }
  0x4e   : > { %5112 = vmatmul.mubr.bf16.gmra.mrb[12].mxu0 %v317_v33 }
  0x4f   : > { %5115 = vmatprep.mubr.bf16.mxu0 %v318_v34  ;;  %v634_v34 = vadd.s32 32, %v6087_v15 }
  0x51   : > { %v694_v54 = vand.u32 15, %v634_v34 }
  0x53   : > { %vm6170_vm3 = vcmp.gt.s32.totalorder %v694_v54, 0 }
  0x56   : > { %5116 = vmatmul.mubr.bf16.gmra.mrb[16].mxu0 %v319_v39 }
  0x57   : > { %5119 = vmatprep.mubr.bf16.mxu0 %v320_v40 }
  0x5e   : > { %5120 = vmatmul.mubr.bf16.gmra.mrb[20].mxu0 %v321_v45 }
  0x5f   : > { %5123 = vmatprep.mubr.bf16.mxu0 %v322_v46  ;;  %v638_v46 = vadd.s32 64, %v6087_v15 }
  0x66   : > { %5124 = vmatmul.mubr.bf16.gmra.mrb[24].mxu0 %v323_v51 }
  0x67   : > { %5127 = vmatprep.mubr.bf16.mxu0 %v324_v52 }
  0x6e   : > { %5128 = vmatmul.mubr.bf16.gmra.mrb[28].mxu0 %v325_v55 }
  0x6f   : > { %5135 = vmatprep.mubr.msk.bf16.mxu0 %vm7429_vm0, %v1258_v61 }
 0x109   : > { %v5101_v3 = vpop.f32.mrb[0].mxu0 }
 0x10a   : > { %v440_v4 = vadd.f32 %v5101_v3, %v6080_v2  ;;  %v431_v5 = vpop.f32.mrb[1].mxu0 }
 0x10b   : > { %v432_v7 = vadd.f32 %v6080_v2, %v431_v5  ;;  %v5102_v8 = vpop.f32.mrb[2].mxu0 }
 0x10c   : > { %v560_v9 = vmax.f32 %v440_v4, 0.0  ;;  %v443_v10 = vadd.f32 %v5102_v8, %v6080_v2  ;;  %v434_v11 = vpop.f32.mrb[3].mxu0  ;;  %v722_v8 = vand.u32 15, %v638_v46 }
 0x10d   : > { %v558_v12 = vmax.f32 %v432_v7, 0.0  ;;  %v435_v13 = vadd.f32 %v6080_v2, %v434_v11  ;;  %v642_v11 = vadd.s32 96, %v6087_v15 }
 0x10e   : > { %599 = vst.msk [vmem:[#allocation2 + $0x28] sm:$0xff] %vm7429_vm0, %v560_v9  ;;  %v561_v14 = vmax.f32 %v443_v10, 0.0  ;;  %v6160_v9 = vld [vmem:[%s7408_s2 + $0x20] sm:$0xff]   ;;  %vm6187_vm5 = vcmp.gt.s32.totalorder %v722_v8, 0 }
 0x10f   : > { %597 = vst.msk [vmem:[#allocation2 + $0x18] sm:$0xff] %vm7429_vm0, %v558_v12  ;;  %v559_v16 = vmax.f32 %v435_v13, 0.0  ;;  %v750_v34 = vand.u32 15, %v642_v11 }
 0x110   : > { %600 = vst.msk [vmem:[#allocation2 + $0x30] sm:$0xff] %vm7429_vm0, %v561_v14 }
 0x111   : > { %598 = vst.msk [vmem:[#allocation2 + $0x20] sm:$0xff] %vm7429_vm0, %v559_v16  ;;  %v5105_v17 = vpop.f32.mrb[4].mxu0  ;;  %v736_v16 = vand.u32 15, %v640_v57  ;;  %vm6237_vm8 = vcmp.gt.s32.totalorder %v750_v34, 0 }
 0x112   : > { %v456_v19 = vadd.f32 %v5105_v17, %v6080_v2  ;;  %v447_v20 = vpop.f32.mrb[5].mxu0 }
 0x113   : > { %v448_v22 = vadd.f32 %v6080_v2, %v447_v20  ;;  %v5106_v23 = vpop.f32.mrb[6].mxu0  ;;  %vm6208_vm7 = vcmp.gt.s32.totalorder %v736_v16, 0 }
 0x114   : > { %v564_v24 = vmax.f32 %v456_v19, 0.0  ;;  %v459_v25 = vadd.f32 %v5106_v23, %v6080_v2  ;;  %v450_v26 = vpop.f32.mrb[7].mxu0 }
 0x115   : > { %v562_v27 = vmax.f32 %v448_v22, 0.0  ;;  %v451_v28 = vadd.f32 %v6080_v2, %v450_v26  ;;  %v1230_v45 = vld [vmem:[#allocation2 + $0x28] sm:$0xff]  ;;  %v7505_v26 = vmov 0 }
 0x116   : > { %603 = vst.msk [vmem:[#allocation2 + $0x48] sm:$0xff] %vm7429_vm0, %v564_v24  ;;  %v565_v31 = vmax.f32 %v459_v25, 0.0  ;;  %v6106_v33 = vld [vmem:[#allocation2 + $0x17] sm:$0xff]  ;;  %v7506_v26 = vsel %vm6187_vm5, 4294967295, %v7505_v26 }
 0x117   : > { %601 = vst.msk [vmem:[#allocation2 + $0x38] sm:$0xff] %vm7429_vm0, %v562_v27  ;;  %v563_v35 = vmax.f32 %v451_v28, 0.0  ;;  %v1228_v36 = vld [vmem:[#allocation2 + $0x18] sm:$0xff]  ;;  %v1231_v37 = vld [vmem:[#allocation2 + $0x30] sm:$0xff]  ;;  %v2187_v42 = vsel %vm6098_vm1, %v6106_v33, 0.0  ;;  %v7507_v27 = vmov 0 }
 0x118   : > { %604 = vst.msk [vmem:[#allocation2 + $0x50] sm:$0xff] %vm7429_vm0, %v565_v31  ;;  %v1229_v39 = vld [vmem:[#allocation2 + $0x20] sm:$0xff]  ;;  %v6131_v52 = vpack.c.bf16 %v1231_v37, %v1230_v45  ;;  %v6141_v58 = vld [vmem:[#allocation2 + $0x2f] sm:$0xff]  ;;  %v7508_v27 = vsel %vm6191_vm6, 4294967295, %v7507_v27 }
 0x119   : > { %v6112_v40 = vld [vmem:[#allocation2 + $0x1f] sm:$0xff]  ;;  %v6114_v41 = vld [vmem:[#allocation2 + $0x27] sm:$0xff]  ;;  %602 = vst.msk [vmem:[#allocation2 + $0x40] sm:$0xff] %vm7429_vm0, %v563_v35  ;;  %v5109_v43 = vpop.f32.mrb[8].mxu0  ;;  %v6120_v44 = vpack.c.bf16 %v1229_v39, %v1228_v36  ;;  %v6203_v35 = vadd.s32 112, %v6087_v15  ;;  %v7510_v39 = vmov 0 }
 0x11a   : > { %v6128_v49 = vpack.c.bf16 %v6112_v40, %v2187_v42  ;;  %v472_v50 = vadd.f32 %v5109_v43, %v6080_v2  ;;  %v463_v51 = vpop.f32.mrb[9].mxu0  ;;  %v3169_v60 = vsel %vm6098_vm1, %v6114_v41, 0.0  ;;  %v2189_v5 = vsel %vm6133_vm2, %v6114_v41, 0.0 }
 0x11b   : > { %v464_v55 = vadd.f32 %v6080_v2, %v463_v51  ;;  %v5110_v56 = vpop.f32.mrb[10].mxu0  ;;  %5136 = vmatmul.mubr.msk.bf16.vlgmr.msra.gmra.mrb[32].mxu0 %vm7429_vm0, %v6120_v44  ;;  %v6151_v4 = vpack.c.bf16 %v6141_v58, %v3169_v60  ;;  %v6163_v10 = vpack.c.bf16 %v6141_v58, %v2189_v5  ;;  %v7511_v39 = vsel %vm6208_vm7, 4294967295, %v7510_v39 }
 0x11c   : > { %7495 = vst [vmem:[#allocation7_spill] sm:$0xff] %v6128_v49  ;;  %v568_v61 = vmax.f32 %v472_v50, 0.0  ;;  %v475_v63 = vadd.f32 %v5110_v56, %v6080_v2  ;;  %v466_v3 = vpop.f32.mrb[11].mxu0  ;;  %5139 = vmatprep.mubr.msk.bf16.mxu0 %vm7429_vm0, %v6131_v52  ;;  %5168 = vmatpush3.bf16.msra.mxu0 %v6074_v1  ;;  %7512 = vst [vmem:[#allocation12_spill] sm:$0xff] %v7511_v39  ;;  %v6213_v42 = vadd.s32 128, %v6087_v15 }
 0x11d   : > { %7498 = vst [vmem:[#allocation8_spill] sm:$0xff] %v6151_v4  ;;  %v566_v6 = vmax.f32 %v464_v55, 0.0  ;;  %v467_v7 = vadd.f32 %v6080_v2, %v466_v3  ;;  %5169 = vmatprep.subr.bf16.mxu0 %v5808_v47  ;;  %7499 = vst [vmem:[#allocation9_spill] sm:$0xff] %v6163_v10  ;;  %v1234_v25 = vld [vmem:[#allocation2 + $0x48] sm:$0xff]  ;;  %v764_v3 = vand.u32 15, %v6203_v35 }
 0x11e   : > { %607 = vst.msk [vmem:[#allocation2 + $0x68] sm:$0xff] %vm7429_vm0, %v568_v61  ;;  %v569_v1 = vmax.f32 %v475_v63, 0.0  ;;  %v6167_v12 = vld [vmem:[#allocation2 + $0x37] sm:$0xff]  ;;  %v7516_v63 = vmov 0 }
 0x11f   : > { %605 = vst.msk [vmem:[#allocation2 + $0x58] sm:$0xff] %vm7429_vm0, %v566_v6  ;;  %v567_v13 = vmax.f32 %v467_v7, 0.0  ;;  %v1235_v14 = vld [vmem:[#allocation2 + $0x50] sm:$0xff]  ;;  %v1232_v18 = vld [vmem:[#allocation2 + $0x38] sm:$0xff]  ;;  %v2191_v22 = vsel %vm6170_vm3, %v6167_v12, 0.0  ;;  %v3171_v43 = vsel %vm6133_vm2, %v6167_v12, 0.0 }
 0x120   : > { %608 = vst.msk [vmem:[#allocation2 + $0x70] sm:$0xff] %vm7429_vm0, %v569_v1  ;;  %v1233_v19 = vld [vmem:[#allocation2 + $0x40] sm:$0xff]  ;;  %5170 = vmatpush3.bf16.msra.mxu0 %v5808_v47  ;;  %v6200_v32 = vpack.c.bf16 %v1235_v14, %v1234_v25  ;;  %v6221_v48 = vld [vmem:[#allocation2 + $0x4f] sm:$0xff]  ;;  %v7517_v63 = vsel %vm6237_vm8, 4294967295, %v7516_v63  ;;  %vm6290_vm9 = vcmp.gt.s32.totalorder %v764_v3, 0 }
 0x121   : > { %v6175_v20 = vld [vmem:[#allocation2 + $0x3f] sm:$0xff]  ;;  %606 = vst.msk [vmem:[#allocation2 + $0x60] sm:$0xff] %vm7429_vm0, %v567_v13  ;;  %v5113_v23 = vpop.f32.mrb[12].mxu0  ;;  %v6185_v24 = vpack.c.bf16 %v1233_v19, %v1232_v18  ;;  %5203 = vmatprep.subr.bf16.mxu0 %v6160_v9  ;;  %v3141_v36 = vld [vmem:[#allocation2 + $0x47] sm:$0xff]  ;;  %v6229_v56 = vld [vmem:[#allocation2 + $0x31] sm:$0xff] }
 0x122   : > { %v6197_v28 = vpack.c.bf16 %v6175_v20, %v2191_v22  ;;  %v488_v30 = vadd.f32 %v5113_v23, %v6080_v2  ;;  %v479_v31 = vpop.f32.mrb[13].mxu0  ;;  %v6224_v50 = vpack.c.bf16 %v6175_v20, %v3171_v43  ;;  %v3173_v51 = vsel %vm6170_vm3, %v3141_v36, 0.0  ;;  %7514 = vst [vmem:[#allocation14_spill] sm:$0xff] %v6229_v56  ;;  %7518 = vst [vmem:[#allocation16_spill] sm:$0xff] %v7517_v63  ;;  %v6305_v3 = vld [vmem:[%s7408_s2 + $0x50] sm:$0xff]  }
 0x123   : > { %v480_v37 = vadd.f32 %v6080_v2, %v479_v31  ;;  %v5114_v38 = vpop.f32.mrb[14].mxu0  ;;  %5140 = vmatmul.mubr.msk.bf16.gmra.mrb[36].mxu0 %vm7429_vm0, %v6185_v24  ;;  %v6232_v57 = vpack.c.bf16 %v6221_v48, %v3173_v51  ;;  %v2193_v59 = vsel %vm6191_vm6, %v3141_v36, 0.0  ;;  %v778_v22 = vand.u32 15, %v6213_v42 }
 0x124   : > { %7509 = vst [vmem:[#allocation11_spill] sm:$0xff] %v6197_v28  ;;  %v572_v45 = vmax.f32 %v488_v30, 0.0  ;;  %v491_v46 = vadd.f32 %v5114_v38, %v6080_v2  ;;  %v482_v47 = vpop.f32.mrb[15].mxu0  ;;  %5143 = vmatprep.mubr.msk.bf16.mxu0 %vm7429_vm0, %v6200_v32  ;;  %7513 = vst [vmem:[#allocation13_spill] sm:$0xff] %v6224_v50  ;;  %v6243_v5 = vpack.c.bf16 %v6221_v48, %v2193_v59  ;;  %v6257_v23 = vadd.s32 144, %v6087_v15 }
 0x125   : > { %v570_v54 = vmax.f32 %v480_v37, 0.0  ;;  %v483_v55 = vadd.f32 %v6080_v2, %v482_v47  ;;  %7515 = vst [vmem:[#allocation15_spill] sm:$0xff] %v6232_v57  ;;  %v1238_v1 = vld [vmem:[#allocation2 + $0x68] sm:$0xff]  ;;  %vm6297_vm10 = vcmp.gt.s32.totalorder %v778_v22, 0  ;;  %v650_v22 = vadd.s32 160, %v6087_v15 }
 0x126   : > { %611 = vst.msk [vmem:[#allocation2 + $0x88] sm:$0xff] %vm7429_vm0, %v572_v45  ;;  %v573_v60 = vmax.f32 %v491_v46, 0.0  ;;  %v2163_v61 = vld [vmem:[#allocation2 + $0x57] sm:$0xff]  ;;  %7519 = vst [vmem:[#allocation17_spill] sm:$0xff] %v6243_v5  ;;  %v5806_v45 = vld [vmem:[%s7408_s2 + $0x48] sm:$0xff]   ;;  %v6417_v50 = vadd.s32 120, %v6087_v15 }
 0x127   : > { %609 = vst.msk [vmem:[#allocation2 + $0x78] sm:$0xff] %vm7429_vm0, %v570_v54  ;;  %v571_v6 = vmax.f32 %v483_v55, 0.0  ;;  %v1236_v7 = vld [vmem:[#allocation2 + $0x58] sm:$0xff]  ;;  %v2195_v8 = vsel %vm6187_vm5, %v2163_v61, 0.0  ;;  %v1239_v11 = vld [vmem:[#allocation2 + $0x70] sm:$0xff]  ;;  %v1184_v13 = vsel %vm6208_vm7, %v2163_v61, 0.0 }
 0x128   : > { %612 = vst.msk [vmem:[#allocation2 + $0x90] sm:$0xff] %vm7429_vm0, %v573_v60  ;;  %v1237_v14 = vld [vmem:[#allocation2 + $0x60] sm:$0xff]  ;;  %v6253_v19 = vpack.c.bf16 %v1239_v11, %v1238_v1  ;;  %v2166_v36 = vld [vmem:[#allocation2 + $0x6f] sm:$0xff]  ;;  %v7587_v29 = vsel %vm6177_vm4, %v6229_v56, 0.0 }
 0x129   : > { %v2164_v16 = vld [vmem:[#allocation2 + $0x5f] sm:$0xff]  ;;  %v6251_v18 = vld [vmem:[#allocation2 + $0x67] sm:$0xff]  ;;  %610 = vst.msk [vmem:[#allocation2 + $0x80] sm:$0xff] %vm7429_vm0, %v571_v6  ;;  %v5117_v30 = vpop.f32.mrb[16].mxu0  ;;  %v6263_v31 = vpack.c.bf16 %v1237_v14, %v1236_v7  ;;  %v7521_v6 = vmov 0  ;;  %v792_v14 = vand.u32 15, %v6257_v23 }
 0x12a   : > { %7520 = vst [vmem:[#allocation18_spill] sm:$0xff] %v6251_v18  ;;  %v2223_v34 = vpack.c.bf16 %v2164_v16, %v2195_v8  ;;  %v2197_v37 = vsel %vm6208_vm7, %v6251_v18, 0.0  ;;  %v504_v38 = vadd.f32 %v5117_v30, %v6080_v2  ;;  %v495_v42 = vpop.f32.mrb[17].mxu0  ;;  %v6275_v46 = vpack.c.bf16 %v2164_v16, %v1184_v13  ;;  %v6592_v21 = vld [vmem:[#allocation2 + $0x59] sm:$0xff]  ;;  %v6596_v53 = vld [vmem:[#allocation2 + $0x69] sm:$0xff] }
 0x12b   : > { %v2224_v43 = vpack.c.bf16 %v2166_v36, %v2197_v37  ;;  %v1186_v47 = vsel %vm6237_vm8, %v6251_v18, 0.0  ;;  %v496_v51 = vadd.f32 %v6080_v2, %v495_v42  ;;  %v5118_v54 = vpop.f32.mrb[18].mxu0  ;;  %5144 = vmatmul.mubr.msk.bf16.gmra.mrb[40].mxu0 %vm7429_vm0, %v6263_v31  ;;  %v7522_v6 = vsel %vm6290_vm9, 4294967295, %v7521_v6 }
 0x12c   : > { %5251 = vmatprep.mubr.msk.bf16.mxu1 %vm7429_vm0, %v2223_v34  ;;  %v6284_v55 = vpack.c.bf16 %v2166_v36, %v1186_v47  ;;  %v576_v59 = vmax.f32 %v504_v38, 0.0  ;;  %v507_v60 = vadd.f32 %v5118_v54, %v6080_v2  ;;  %v498_v61 = vpop.f32.mrb[19].mxu0  ;;  %5147 = vmatprep.mubr.msk.bf16.mxu0 %vm7429_vm0, %v6253_v19  ;;  %7523 = vst [vmem:[#allocation19_spill] sm:$0xff] %v7522_v6  ;;  %v7524_v13 = vmov 0 }
 0x12d   : > { %5252 = vmatmul.mubr.msk.bf16.vlgmr.msra.gmra.mrb[0].mxu1 %vm7429_vm0, %v2224_v43  ;;  %v574_v7 = vmax.f32 %v496_v51, 0.0  ;;  %v499_v8 = vadd.f32 %v6080_v2, %v498_v61  ;;  %v7525_v13 = vsel %vm6297_vm10, 4294967295, %v7524_v13  ;;  %v1242_v51 = vld [vmem:[#allocation2 + $0x88] sm:$0xff]  ;;  %vm6331_vm11 = vcmp.gt.s32.totalorder %v792_v14, 0 }
 0x12e   : > { %5276 = vmatpush3.bf16.msra.mxu1 %v6068_v0  ;;  %615 = vst.msk [vmem:[#allocation2 + $0xa8] sm:$0xff] %vm7429_vm0, %v576_v59  ;;  %v577_v1 = vmax.f32 %v507_v60, 0.0  ;;  %v2167_v11 = vld [vmem:[#allocation2 + $0x77] sm:$0xff]  ;;  %7526 = vst [vmem:[#allocation20_spill] sm:$0xff] %v7525_v13 }
 0x12f   : > { %5277 = vmatprep.subr.bf16.mxu1 %v5806_v45  ;;  %613 = vst.msk [vmem:[#allocation2 + $0x98] sm:$0xff] %vm7429_vm0, %v574_v7  ;;  %v575_v16 = vmax.f32 %v499_v8, 0.0  ;;  %v1240_v0 = vld [vmem:[#allocation2 + $0x78] sm:$0xff]  ;;  %v2199_v30 = vsel %vm6237_vm8, %v2167_v11, 0.0  ;;  %v1243_v34 = vld [vmem:[#allocation2 + $0x90] sm:$0xff]  ;;  %v1188_v36 = vsel %vm6290_vm9, %v2167_v11, 0.0 }
 0x130   : > { %616 = vst.msk [vmem:[#allocation2 + $0xb0] sm:$0xff] %vm7429_vm0, %v577_v1  ;;  %v1241_v23 = vld [vmem:[#allocation2 + $0x80] sm:$0xff]  ;;  %v2170_v54 = vld [vmem:[#allocation2 + $0x8f] sm:$0xff]  ;;  %v6322_v8 = vpack.c.bf16 %v1243_v34, %v1242_v51 }
 0x131   : > { %v2168_v37 = vld [vmem:[#allocation2 + $0x7f] sm:$0xff]  ;;  %v2169_v38 = vld [vmem:[#allocation2 + $0x87] sm:$0xff]  ;;  %614 = vst.msk [vmem:[#allocation2 + $0xa0] sm:$0xff] %vm7429_vm0, %v575_v16  ;;  %v5121_v42 = vpop.f32.mrb[20].mxu0  ;;  %v6315_v43 = vpack.c.bf16 %v1241_v23, %v1240_v0 }
 0x132   : > { %v2225_v47 = vpack.c.bf16 %v2168_v37, %v2199_v30  ;;  %v2201_v59 = vsel %vm6290_vm9, %v2169_v38, 0.0  ;;  %5278 = vmatpush3.bf16.msra.mxu1 %v5806_v45  ;;  %v6319_v60 = vpack.c.bf16 %v2168_v37, %v1188_v36  ;;  %v520_v61 = vadd.f32 %v5121_v42, %v6080_v2  ;;  %v511_v7 = vpop.f32.mrb[21].mxu0 }
 0x133   : > { %v2226_v1 = vpack.c.bf16 %v2170_v54, %v2201_v59  ;;  %5311 = vmatprep.subr.bf16.mxu1 %v6305_v3  ;;  %v1190_v11 = vsel %vm6297_vm10, %v2169_v38, 0.0  ;;  %v512_v16 = vadd.f32 %v6080_v2, %v511_v7  ;;  %v5122_v0 = vpop.f32.mrb[22].mxu0  ;;  %5148 = vmatmul.mubr.msk.bf16.gmra.mrb[44].mxu0 %vm7429_vm0, %v6315_v43  ;;  %v7527_v45 = vmov 0 }
 0x134   : > { %5255 = vmatprep.mubr.msk.bf16.mxu1 %vm7429_vm0, %v2225_v47  ;;  %v7528_v45 = vsel %vm6331_vm11, 4294967295, %v7527_v45  ;;  %v806_v30 = vand.u32 15, %v650_v22  ;;  %v6335_v34 = vpack.c.bf16 %v2170_v54, %v1190_v11  ;;  %v580_v36 = vmax.f32 %v520_v61, 0.0  ;;  %v514_v37 = vpop.f32.mrb[23].mxu0  ;;  %5151 = vmatprep.mubr.msk.bf16.mxu0 %vm7429_vm0, %v6322_v8 }
 0x135   : > { %7529 = vst [vmem:[#allocation21_spill] sm:$0xff] %v7528_v45  ;;  %v523_v23 = vadd.f32 %v5122_v0, %v6080_v2  ;;  %5256 = vmatmul.mubr.msk.bf16.gmra.mrb[4].mxu1 %vm7429_vm0, %v2226_v1  ;;  %v652_v38 = vadd.s32 176, %v6087_v15  ;;  %v654_v42 = vadd.s32 192, %v6087_v15  ;;  %v578_v14 = vmax.f32 %v512_v16, 0.0  ;;  %v1246_v6 = vld [vmem:[#allocation2 + $0xa8] sm:$0xff] }
 0x136   : > { %v515_v47 = vadd.f32 %v6080_v2, %v514_v37  ;;  %619 = vst.msk [vmem:[#allocation2 + $0xc8] sm:$0xff] %vm7429_vm0, %v580_v36  ;;  %v2171_v51 = vld [vmem:[#allocation2 + $0x97] sm:$0xff]  ;;  %v6346_v54 = vadd.s32 24, %v6087_v15  ;;  %v6349_v59 = vadd.s32 40, %v6087_v15  ;;  %vm6354_vm12 = vcmp.gt.s32.totalorder %v806_v30, 0 }
 0x137   : > { %v581_v22 = vmax.f32 %v523_v23, 0.0  ;;  %617 = vst.msk [vmem:[#allocation2 + $0xb8] sm:$0xff] %vm7429_vm0, %v578_v14  ;;  %v1244_v7 = vld [vmem:[#allocation2 + $0x98] sm:$0xff]  ;;  %v2203_v1 = vsel %vm6297_vm10, %v2171_v51, 0.0  ;;  %v1247_v11 = vld [vmem:[#allocation2 + $0xb0] sm:$0xff]  ;;  %v7530_v16 = vmov 0 }
 0x138   : > { %v579_v61 = vmax.f32 %v515_v47, 0.0  ;;  %v7531_v16 = vsel %vm6354_vm12, 4294967295, %v7530_v16  ;;  %v1192_v0 = vsel %vm6331_vm11, %v2171_v51, 0.0  ;;  %v1245_v36 = vld [vmem:[#allocation2 + $0xa0] sm:$0xff]  ;;  %v820_v35 = vand.u32 15, %v652_v38  ;;  %v2174_v63 = vld [vmem:[#allocation2 + $0xaf] sm:$0xff] }
 0x139   : > { %7532 = vst [vmem:[#allocation22_spill] sm:$0xff] %v7531_v16  ;;  %620 = vst.msk [vmem:[#allocation2 + $0xd0] sm:$0xff] %vm7429_vm0, %v581_v22  ;;  %v2172_v23 = vld [vmem:[#allocation2 + $0x9f] sm:$0xff]  ;;  %v2173_v37 = vld [vmem:[#allocation2 + $0xa7] sm:$0xff]  ;;  %v834_v14 = vand.u32 15, %v654_v42  ;;  %v6362_v47 = vadd.s32 56, %v6087_v15  ;;  %v6365_v30 = vpack.c.bf16 %v1245_v36, %v1244_v7  ;;  %v6372_v42 = vpack.c.bf16 %v1247_v11, %v1246_v6 }
 0x13a   : > { %618 = vst.msk [vmem:[#allocation2 + $0xc0] sm:$0xff] %vm7429_vm0, %v579_v61  ;;  %v5125_v25 = vpop.f32.mrb[24].mxu0  ;;  %v2227_v13 = vpack.c.bf16 %v2172_v23, %v2203_v1  ;;  %v2205_v51 = vsel %vm6331_vm11, %v2173_v37, 0.0  ;;  %v6369_v22 = vpack.c.bf16 %v2172_v23, %v1192_v0  ;;  %v1194_v61 = vsel %vm6354_vm12, %v2173_v37, 0.0 }
 0x13b   : > { %v536_v39 = vadd.f32 %v5125_v25, %v6080_v2  ;;  %v527_v38 = vpop.f32.mrb[25].mxu0  ;;  %7534 = vst [vmem:[#allocation24_spill] sm:$0xff] %v6372_v42  ;;  %v2228_v18 = vpack.c.bf16 %v2174_v63, %v2205_v51  ;;  %5152 = vmatmul.mubr.msk.bf16.gmra.mrb[48].mxu0 %vm7429_vm0, %v6365_v30  ;;  %v6380_v1 = vpack.c.bf16 %v2174_v63, %v1194_v61  ;;  %v687_v0 = vand.u32 15, %v6346_v54 }
 0x13c   : > { %7533 = vst [vmem:[#allocation23_spill] sm:$0xff] %v6369_v22  ;;  %v528_v7 = vadd.f32 %v6080_v2, %v527_v38  ;;  %v5126_v36 = vpop.f32.mrb[26].mxu0  ;;  %5259 = vmatprep.mubr.msk.bf16.mxu1 %vm7429_vm0, %v2227_v13  ;;  %v701_v25 = vand.u32 15, %v6349_v59  ;;  %5155 = vmatprep.mubr.msk.bf16.mxu0 %vm7429_vm0, %v6372_v42  ;;  %vm6388_vm13 = vcmp.gt.s32.totalorder %v820_v35, 0  ;;  %v7536_v37 = vmov 0  ;;  %v6494_v22 = vld [vmem:[#allocation2 + $0x39] sm:$0xff] }
 0x13d   : > { %7535 = vst [vmem:[#allocation25_spill] sm:$0xff] %v6380_v1  ;;  %v584_v6 = vmax.f32 %v536_v39, 0.0  ;;  %v539_v11 = vadd.f32 %v5126_v36, %v6080_v2  ;;  %v530_v23 = vpop.f32.mrb[27].mxu0  ;;  %5260 = vmatmul.mubr.msk.bf16.gmra.mrb[8].mxu1 %vm7429_vm0, %v2228_v18  ;;  %v7537_v37 = vsel %vm6388_vm13, 4294967295, %v7536_v37  ;;  %v656_v63 = vadd.s32 208, %v6087_v15  ;;  %v1250_v10 = vld [vmem:[#allocation2 + $0xc8] sm:$0xff] }
 0x13e   : > { %7538 = vst [vmem:[#allocation26_spill] sm:$0xff] %v7537_v37  ;;  %v582_v13 = vmax.f32 %v528_v7, 0.0  ;;  %v531_v54 = vadd.f32 %v6080_v2, %v530_v23  ;;  %v6396_v39 = vadd.s32 72, %v6087_v15  ;;  %v2175_v38 = vld [vmem:[#allocation2 + $0xb7] sm:$0xff]  ;;  %vm6399_vm14 = vcmp.gt.s32.totalorder %v834_v14, 0  ;;  %7557 = vst [vmem:[#allocation35_spill] sm:$0xff] %v6494_v22 }
 0x13f   : > { %623 = vst.msk [vmem:[#allocation2 + $0xe8] sm:$0xff] %vm7429_vm0, %v584_v6  ;;  %v585_v51 = vmax.f32 %v539_v11, 0.0  ;;  %v7539_v18 = vmov 0  ;;  %v6404_v35 = vadd.s32 88, %v6087_v15  ;;  %v6407_v61 = vadd.s32 104, %v6087_v15  ;;  %v1248_v36 = vld [vmem:[#allocation2 + $0xb8] sm:$0xff] }
 0x140   : > { %v7540_v18 = vsel %vm6399_vm14, 4294967295, %v7539_v18  ;;  %621 = vst.msk [vmem:[#allocation2 + $0xd8] sm:$0xff] %vm7429_vm0, %v582_v13  ;;  %v583_v7 = vmax.f32 %v531_v54, 0.0  ;;  %v2207_v23 = vsel %vm6354_vm12, %v2175_v38, 0.0  ;;  %v1251_v6 = vld [vmem:[#allocation2 + $0xd0] sm:$0xff]  ;;  %v658_v11 = vadd.s32 224, %v6087_v15 }
 0x141   : > { %7541 = vst [vmem:[#allocation27_spill] sm:$0xff] %v7540_v18  ;;  %v1196_v14 = vsel %vm6388_vm13, %v2175_v38, 0.0  ;;  %624 = vst.msk [vmem:[#allocation2 + $0xf0] sm:$0xff] %vm7429_vm0, %v585_v51  ;;  %v1249_v59 = vld [vmem:[#allocation2 + $0xc0] sm:$0xff]  ;;  %v848_v57 = vand.u32 15, %v656_v63  ;;  %v6420_v13 = vadd.s32 136, %v6087_v15  ;;  %v6430_v42 = vpack.c.bf16 %v1251_v6, %v1250_v10 }
 0x142   : > { %v2176_v45 = vld [vmem:[#allocation2 + $0xbf] sm:$0xff]  ;;  %v2177_v5 = vld [vmem:[#allocation2 + $0xc7] sm:$0xff]  ;;  %622 = vst.msk [vmem:[#allocation2 + $0xe0] sm:$0xff] %vm7429_vm0, %v583_v7  ;;  %v5129_v54 = vpop.f32.mrb[28].mxu0  ;;  %v6423_v16 = vpack.c.bf16 %v1249_v59, %v1248_v36  ;;  %v2178_v38 = vld [vmem:[#allocation2 + $0xcf] sm:$0xff]  ;;  %vm6455_vm12 = vcmp.lt.s32.totalorder %v701_v25, 15 }
 0x143   : > { %v2229_v28 = vpack.c.bf16 %v2176_v45, %v2207_v23  ;;  %v2209_v51 = vsel %vm6388_vm13, %v2177_v5, 0.0  ;;  %v6427_v4 = vpack.c.bf16 %v2176_v45, %v1196_v14  ;;  %v552_v63 = vadd.f32 %v5129_v54, %v6080_v2  ;;  %v543_v49 = vpop.f32.mrb[29].mxu0  ;;  %7544 = vst [vmem:[#allocation30_spill] sm:$0xff] %v6430_v42 }
 0x144   : > { %7542 = vst [vmem:[#allocation28_spill] sm:$0xff] %v6423_v16  ;;  %v2230_v1 = vpack.c.bf16 %v2178_v38, %v2209_v51  ;;  %v1198_v7 = vsel %vm6399_vm14, %v2177_v5, 0.0  ;;  %v544_v59 = vadd.f32 %v6080_v2, %v543_v49  ;;  %v5130_v36 = vpop.f32.mrb[30].mxu0  ;;  %5156 = vmatmul.mubr.msk.bf16.gmra.mrb[52].mxu0 %vm7429_vm0, %v6423_v16  ;;  %v862_v23 = vand.u32 15, %v658_v11  ;;  %v6600_v49 = vld [vmem:[#allocation2 + $0x81] sm:$0xff] }
 0x145   : > { %7543 = vst [vmem:[#allocation29_spill] sm:$0xff] %v6427_v4  ;;  %5263 = vmatprep.mubr.msk.bf16.mxu1 %vm7429_vm0, %v2229_v28  ;;  %v6438_v45 = vpack.c.bf16 %v2178_v38, %v1198_v7  ;;  %v729_v14 = vand.u32 15, %v6396_v39  ;;  %v588_v54 = vmax.f32 %v552_v63, 0.0  ;;  %v555_v10 = vadd.f32 %v5130_v36, %v6080_v2  ;;  %v546_v6 = vpop.f32.mrb[31].mxu0  ;;  %5159 = vmatprep.mubr.msk.bf16.mxu0 %vm7429_vm0, %v6430_v42  ;;  %v1046_v4 = vld [vmem:[#allocation2 + $0x7] sm:$0xff] }
 0x146   : > { %5264 = vmatmul.mubr.msk.bf16.gmra.mrb[12].mxu1 %vm7429_vm0, %v2230_v1  ;;  %vm6445_vm15 = vcmp.gt.s32.totalorder %v848_v57, 0  ;;  %v660_v28 = vadd.s32 240, %v6087_v15  ;;  %vm6450_vm13 = vcmp.lt.s32.totalorder %v687_v0, 15  ;;  %v7548_v5 = vmov 0  ;;  %v1254_v37 = vld [vmem:[#allocation2 + $0xe8] sm:$0xff] }
 0x147   : > { %7545 = vst [vmem:[#allocation31_spill] sm:$0xff] %v6438_v45  ;;  %v7549_v5 = vsel %vm6450_vm13, 4294967295, %v7548_v5  ;;  %v586_v39 = vmax.f32 %v544_v59, 0.0  ;;  %v547_v11 = vadd.f32 %v6080_v2, %v546_v6  ;;  %v7551_v38 = vmov 0  ;;  %627 = vst.msk [vmem:[#allocation2 + $0x108] sm:$0xff] %vm7429_vm0, %v588_v54  ;;  %v2179_v63 = vld [vmem:[#allocation2 + $0xd7] sm:$0xff] }
 0x148   : > { %7550 = vst [vmem:[#allocation32_spill] sm:$0xff] %v7549_v5  ;;  %v7552_v38 = vsel %vm6455_vm12, 4294967295, %v7551_v38  ;;  %v743_v51 = vand.u32 15, %v6404_v35  ;;  %v757_v57 = vand.u32 15, %v6407_v61  ;;  %v589_v1 = vmax.f32 %v555_v10, 0.0  ;;  %v1252_v25 = vld [vmem:[#allocation2 + $0xd8] sm:$0xff] }
 0x149   : > { %7553 = vst [vmem:[#allocation33_spill] sm:$0xff] %v7552_v38  ;;  %v771_v0 = vand.u32 15, %v6417_v50  ;;  %v785_v7 = vand.u32 15, %v6420_v13  ;;  %v6465_v59 = vadd.s32 152, %v6087_v15  ;;  %625 = vst.msk [vmem:[#allocation2 + $0xf8] sm:$0xff] %vm7429_vm0, %v586_v39  ;;  %v587_v2 = vmax.f32 %v547_v11, 0.0 }
 0x14a   : > { %v2211_v35 = vsel %vm6399_vm14, %v2179_v63, 0.0  ;;  %v1255_v36 = vld [vmem:[#allocation2 + $0xf0] sm:$0xff]  ;;  %vm6470_vm11 = vcmp.gt.s32.totalorder %v862_v23, 0  ;;  %v1200_v50 = vsel %vm6445_vm15, %v2179_v63, 0.0  ;;  %628 = vst.msk [vmem:[#allocation2 + $0x110] sm:$0xff] %vm7429_vm0, %v589_v1  ;;  %v1253_v13 = vld [vmem:[#allocation2 + $0xe0] sm:$0xff] }
 0x14b   : > { %v2180_v54 = vld [vmem:[#allocation2 + $0xdf] sm:$0xff]  ;;  %v2181_v10 = vld [vmem:[#allocation2 + $0xe7] sm:$0xff]  ;;  %v876_v6 = vand.u32 15, %v660_v28  ;;  %v6478_v39 = vadd.s32 168, %v6087_v15  ;;  %v6481_v11 = vadd.s32 184, %v6087_v15  ;;  %626 = vst.msk [vmem:[#allocation2 + $0x100] sm:$0xff] %vm7429_vm0, %v587_v2  ;;  %v6484_v23 = vpack.c.bf16 %v1253_v13, %v1252_v25 }
 0x14c   : > { %v2231_v18 = vpack.c.bf16 %v2180_v54, %v2211_v35  ;;  %v2182_v42 = vld [vmem:[#allocation2 + $0xef] sm:$0xff]  ;;  %v2213_v1 = vsel %vm6445_vm15, %v2181_v10, 0.0  ;;  %v6488_v63 = vpack.c.bf16 %v2180_v54, %v1200_v50  ;;  %v6490_v45 = vpack.c.bf16 %v1255_v36, %v1254_v37  ;;  %v6496_v2 = vld [vmem:[#allocation2 + $0x41] sm:$0xff] }
 0x14d   : > { %v2232_v28 = vpack.c.bf16 %v2182_v42, %v2213_v1  ;;  %v1202_v16 = vsel %vm6470_vm11, %v2181_v10, 0.0  ;;  %7558 = vst [vmem:[#allocation36_spill] sm:$0xff] %v6496_v2  ;;  %v7559_v25 = vand.u32 15, %v6362_v47  ;;  %v7560_v35 = vmov 0  ;;  %v6509_v36 = vld [vmem:[#allocation2 + $0x51] sm:$0xff]  ;;  %v6515_v13 = vld [vmem:[#allocation2 + $0x61] sm:$0xff] }
 0x14e   : > { %7556 = vst [vmem:[#allocation34_spill] sm:$0xff] %v6490_v45  ;;  %vm7563_vm14 = vcmask 261120   ;;  %v6507_v37 = vpack.c.bf16 %v2182_v42, %v1202_v16  ;;  %7566 = vst [vmem:[#allocation39_spill] sm:$0xff] %v6509_v36  ;;  %vm6511_vm9 = vcmp.lt.s32.totalorder %v729_v14, 15  ;;  %v7567_v50 = vmov 0  ;;  %v6517_v47 = vld [vmem:[#allocation2 + $0x71] sm:$0xff] }
 0x14f   : > { %vm6500_vm0 = vcmp.lt.s32.totalorder %v7559_v25, 15  ;;  %5160 = vmatmul.mubr.msk.bf16.gmra.mrb[56].mxu0 %vm7563_vm14, %v6484_v23  ;;  %vm7564_vm10 = vmmov %vm7563_vm14  ;;  %v7568_v50 = vsel %vm6511_vm9, 4294967295, %v7567_v50  ;;  %7570 = vst [vmem:[#allocation41_spill] sm:$0xff] %v6515_v13  ;;  %v655_v54 = vadd.s32 200, %v6087_v15  ;;  %v6521_v10 = vadd.s32 216, %v6087_v15  ;;  %v6530_v42 = vld [vmem:[#allocation2 + $0x29] sm:$0xff] }
 0x150   : > { %v7561_v35 = vsel %vm6500_vm0, 4294967295, %v7560_v35  ;;  %5267 = vmatprep.mubr.msk.bf16.mxu1 %vm7564_vm10, %v2231_v18  ;;  %7565 = vst [vmem:[#allocation38_spill] sm:$0xff] %v6507_v37  ;;  %7569 = vst [vmem:[#allocation40_spill] sm:$0xff] %v7568_v50  ;;  %vm6526_vm8 = vcmp.gt.s32.totalorder %v876_v6, 0  ;;  %v7573_v16 = vmov 0  ;;  %v799_v18 = vand.u32 15, %v6465_v59 }
 0x151   : > { %7562 = vst [vmem:[#allocation37_spill] sm:$0xff] %v7561_v35  ;;  %7571 = vst [vmem:[#allocation42_spill] sm:$0xff] %v6517_v47  ;;  %5268 = vmatmul.mubr.msk.bf16.gmra.mrb[16].mxu1 %vm7564_vm10, %v2232_v28  ;;  %v7574_v16 = vsel %vm6526_vm8, 4294967295, %v7573_v16  ;;  %v813_v14 = vand.u32 15, %v6478_v39  ;;  %v659_v1 = vadd.s32 232, %v6087_v15  ;;  %v1047_v25 = vld [vmem:[#allocation2 + $0xf] sm:$0xff] }
 0x152   : > { %vm7572_vm14 = vmmov %vm7564_vm10  ;;  %7575 = vst [vmem:[#allocation43_spill] sm:$0xff] %v7574_v16  ;;  %v1174_v37 = vsel %vm6098_vm1, %v1046_v4, 0.0  ;;  %vm6537_vm7 = vcmp.lt.s32.totalorder %v743_v51, 15  ;;  %vm6545_vm10 = vcmp.lt.s32.totalorder %v771_v0, 15  ;;  %v7581_v28 = vmov 0  ;;  %v2186_v5 = vld [vmem:[#allocation2 + $0x10f] sm:$0xff] }
 0x153   : > { %5163 = vmatprep.mubr.msk.bf16.mxu0 %vm7572_vm14, %v6490_v45  ;;  %7576 = vst [vmem:[#allocation44_spill] sm:$0xff] %v6530_v42  ;;  %vm6541_vm14 = vcmp.lt.s32.totalorder %v757_v57, 15  ;;  %v7582_v28 = vsel %vm6545_vm10, 4294967295, %v7581_v28  ;;  %vm6549_vm5 = vcmp.lt.s32.totalorder %v785_v7, 15  ;;  %v7584_v59 = vmov 0  ;;  %v2183_v57 = vld [vmem:[#allocation2 + $0xf7] sm:$0xff] }
 0x154   : > { %7583 = vst [vmem:[#allocation45_spill] sm:$0xff] %v7582_v28  ;;  %v7585_v59 = vsel %vm6549_vm5, 4294967295, %v7584_v59  ;;  %v827_v39 = vand.u32 15, %v6481_v11  ;;  %v6559_v4 = vpack.c.bf16 %v7587_v29, %v6530_v42  ;;  %v3816_v51 = vsel %vm6450_vm13, %v6496_v2, 0.0  ;;  %v1257_v42 = vld [vmem:[#allocation2 + $0x100] sm:$0xff]  ;;  %v6638_v16 = vld [vmem:[#allocation2 + $0xa9] sm:$0xff] }
 0x155   : > { %7586 = vst [vmem:[#allocation46_spill] sm:$0xff] %v7585_v59  ;;  %v6565_v0 = vpack.c.bf16 %v3816_v51, %v6494_v22  ;;  %v3818_v7 = vsel %vm6455_vm12, %v6509_v36, 0.0  ;;  %v3820_v11 = vsel %vm6500_vm0, %v6515_v13, 0.0  ;;  %v3822_v29 = vsel %vm6511_vm9, %v6517_v47, 0.0  ;;  %v2184_v36 = vld [vmem:[#allocation2 + $0xff] sm:$0xff]  ;;  %v2185_v2 = vld [vmem:[#allocation2 + $0x107] sm:$0xff] }
 0x156   : > { %7588 = vst [vmem:[#allocation47_spill] sm:$0xff] %v6559_v4  ;;  %v1256_v4 = vld [vmem:[#allocation2 + $0xf8] sm:$0xff]  ;;  %v2215_v15 = vsel %vm6470_vm11, %v2183_v57, 0.0  ;;  %v1204_v51 = vsel %vm6526_vm8, %v2183_v57, 0.0  ;;  %v855_v22 = vand.u32 15, %v6521_v10  ;;  %v1206_v38 = vpack.c.bf16 %v1047_v25, %v1174_v37  ;;  %v6594_v25 = vld [vmem:[#allocation2 + $0x49] sm:$0xff] }
 0x157   : > { %7589 = vst [vmem:[#allocation48_spill] sm:$0xff] %v6565_v0  ;;  %v841_v0 = vand.u32 15, %v655_v54  ;;  %v1176_v13 = vsel %vm6133_vm2, %v6106_v33, 0.0  ;;  %v869_v50 = vand.u32 15, %v659_v1  ;;  %v3195_v47 = vsel %vm6445_vm15, %v2183_v57, 0.0  ;;  %v6598_v33 = vld [vmem:[#allocation2 + $0x79] sm:$0xff] }
 0x158   : > { %v6586_v35 = vpack.c.bf16 %v1257_v42, %v1256_v4  ;;  %v2233_v56 = vpack.c.bf16 %v2184_v36, %v2215_v15  ;;  %v2217_v54 = vsel %vm6526_vm8, %v2185_v2, 0.0  ;;  %v6590_v10 = vpack.c.bf16 %v2184_v36, %v1204_v51  ;;  %v6602_v42 = vld [vmem:[#allocation2 + $0x91] sm:$0xff]  ;;  %v6617_v57 = vld [vmem:[#allocation2 + $0x99] sm:$0xff]  ;;  %v6619_v51 = vld [vmem:[#allocation2 + $0xa1] sm:$0xff] }
 0x159   : > { %v2234_v37 = vpack.c.bf16 %v2186_v5, %v2217_v54  ;;  %7590 = vst [vmem:[#allocation49_spill] sm:$0xff] %v6602_v42  ;;  %vm6604_vm1 = vcmp.lt.s32.totalorder %v799_v18, 15  ;;  %vm6608_vm2 = vcmp.lt.s32.totalorder %v813_v14, 15  ;;  %v6612_v4 = vpack.c.bf16 %v2184_v36, %v3195_v47  ;;  %7598 = vst [vmem:[#allocation51_spill] sm:$0xff] %v6619_v51  ;;  %v6621_v54 = vld [vmem:[#allocation2 + $0xb1] sm:$0xff]  ;;  %v6636_v47 = vld [vmem:[#allocation2 + $0x89] sm:$0xff] }
 0x15a   : > { %vm7596_vm15 = vcmask 261120   ;;  %7599 = vst [vmem:[#allocation52_spill] sm:$0xff] %v6621_v54  ;;  %vm6623_vm9 = vcmp.lt.s32.totalorder %v827_v39, 15  ;;  %vm6627_vm0 = vcmp.lt.s32.totalorder %v841_v0, 15  ;;  %v3197_v36 = vsel %vm6470_vm11, %v2185_v2, 0.0  ;;  %v6640_v39 = vld [vmem:[#allocation2 + $0xb9] sm:$0xff] }
 0x15b   : > { %7595 = vst [vmem:[#allocation50_spill] sm:$0xff] %v6612_v4  ;;  %5164 = vmatmul.mubr.msk.bf16.gmra.mrb[60].mxu0 %vm7596_vm15, %v6586_v35  ;;  %vm7597_vm8 = vmmov %vm7596_vm15  ;;  %v6642_v4 = vld [vmem:[#allocation2 + $0xc1] sm:$0xff]  ;;  %vm6644_vm12 = vcmp.lt.s32.totalorder %v855_v22, 15  ;;  %v7605_v0 = vmov 0  ;;  %vm6648_vm13 = vcmp.lt.s32.totalorder %v869_v50, 15  ;;  %v7607_v61 = vmov 0 }
 0x15c   : > { %5271 = vmatprep.mubr.msk.bf16.mxu1 %vm7597_vm8, %v2233_v56  ;;  %vm7604_vm15 = vmmov %vm7597_vm8  ;;  %5171 = vmatprep.mubr.msk.bf16.mxu0 %vm7597_vm8, %v1206_v38  ;;  %v1207_v56 = vpack.c.bf16 %v6112_v40, %v1176_v13  ;;  %v7606_v0 = vsel %vm6644_vm12, 4294967295, %v7605_v0  ;;  %v7608_v61 = vsel %vm6648_vm13, 4294967295, %v7607_v61  ;;  %v6652_v2 = vpack.c.bf16 %v2186_v5, %v3197_v36  ;;  %v6659_v38 = vld [vmem:[#allocation2 + $0xd1] sm:$0xff]  ;;  %v6661_v13 = vld [vmem:[#allocation2 + $0xe1] sm:$0xff] }
 0x15d   : > { %5272 = vmatmul.mubr.msk.bf16.gmra.mrb[20].mxu1 %vm7604_vm15, %v2234_v37  ;;  %vm7610_vm11 = vmmov %vm7597_vm8  ;;  %v1178_v40 = vsel %vm6170_vm3, %v6114_v41, 0.0  ;;  %7611 = vst [vmem:[#allocation54_spill] sm:$0xff] %v6661_v13  ;;  %v6663_v22 = vld [vmem:[#allocation2 + $0xf1] sm:$0xff]  ;;  %v6666_v50 = vpack.c.bf16 %v3818_v7, %v6594_v25  ;;  %v6669_v37 = vpack.c.bf16 %v3820_v11, %v6592_v21  ;;  %v6672_v5 = vpack.c.bf16 %v3822_v29, %v6596_v53  ;;  %v6676_v36 = vld [vmem:[#allocation2 + $0xd9] sm:$0xff] }
 0x15e   : > { %7609 = vst [vmem:[#allocation53_spill] sm:$0xff] %v6652_v2  ;;  %5279 = vmatprep.mubr.msk.bf16.mxu1 %vm7610_vm11, %v6120_v44  ;;  %v6674_v44 = vld [vmem:[#allocation2 + $0xc9] sm:$0xff]  ;;  %v3824_v41 = vsel %vm6537_vm7, %v6600_v49, 0.0  ;;  %v3826_v17 = vsel %vm6541_vm14, %v6602_v42, 0.0  ;;  %v3828_v7 = vsel %vm6545_vm10, %v6619_v51, 0.0  ;;  %v3830_v11 = vsel %vm6549_vm5, %v6621_v54, 0.0  ;;  %vm7619_vm3 = vmmov %vm7597_vm8 }
 0x15f   : > { %7612 = vst [vmem:[#allocation55_spill] sm:$0xff] %v6666_v50  ;;  %7613 = vst [vmem:[#allocation56_spill] sm:$0xff] %v6669_v37  ;;  %v6690_v29 = vld [vmem:[#allocation2 + $0xe9] sm:$0xff]  ;;  %v6694_v37 = vld [vmem:[#allocation2 + $0x111] sm:$0xff]  ;;  %v6697_v50 = vpack.c.bf16 %v3824_v41, %v6598_v33  ;;  %v6700_v2 = vpack.c.bf16 %v3826_v17, %v6636_v47  ;;  %v6703_v42 = vpack.c.bf16 %v3828_v7, %v6617_v57  ;;  %v3832_v28 = vsel %vm6604_vm1, %v6642_v4, 0.0 }
 0x160   : > { %7614 = vst [vmem:[#allocation57_spill] sm:$0xff] %v6672_v5  ;;  %v6692_v5 = vld [vmem:[#allocation2 + $0x101] sm:$0xff]  ;;  %v6706_v51 = vpack.c.bf16 %v3830_v11, %v6638_v16  ;;  %v6708_v59 = vld [vmem:[#allocation2 + $0xf9] sm:$0xff]  ;;  %v6710_v54 = vld [vmem:[#allocation2 + $0x109] sm:$0xff]  ;;  %v3834_v41 = vsel %vm6608_vm2, %v6659_v38, 0.0  ;;  %v3836_v17 = vsel %vm6623_vm9, %v6661_v13, 0.0  ;;  %v6725_v11 = vpack.c.bf16 %v3832_v28, %v6640_v39 }
 0x161   : > { %7615 = vst [vmem:[#allocation58_spill] sm:$0xff] %v6697_v50  ;;  %7616 = vst [vmem:[#allocation59_spill] sm:$0xff] %v6700_v2  ;;  %v3838_v7 = vsel %vm6627_vm0, %v6663_v22, 0.0  ;;  %v1208_v50 = vpack.c.bf16 %v6141_v58, %v1178_v40  ;;  %v5810_v13 = vld [vmem:[%s7408_s2 + $0x58] sm:$0xff]   ;;  %v3840_v28 = vsel %vm6644_vm12, %v6692_v5, 0.0  ;;  %v1864_v6 = vsel %vm6545_vm10, %v6600_v49, 0.0 }
 0x162   : > { %7617 = vst [vmem:[#allocation60_spill] sm:$0xff] %v6703_v42  ;;  %7618 = vst [vmem:[#allocation61_spill] sm:$0xff] %v6706_v51  ;;  %v6728_v51 = vpack.c.bf16 %v3834_v41, %v6674_v44  ;;  %v6731_v42 = vpack.c.bf16 %v3836_v17, %v6676_v36  ;;  %v6734_v2 = vpack.c.bf16 %v3838_v7, %v6690_v29  ;;  %v3842_v41 = vsel %vm6648_vm13, %v6694_v37, 0.0  ;;  %v5812_v17 = vld [vmem:[%s7408_s2 + $0x28] sm:$0xff]   ;;  %v7019_v45 = vld [vmem:[%s7408_s2 + $0x80] sm:$0xff]  }
 0x163   : > { %5172 = vmatmul.mubr.msk.bf16.vlgmr.msra.gmra.mrb[32].mxu0 %vm7619_vm3, %v1207_v56  ;;  %v6751_v58 = vpack.c.bf16 %v3840_v28, %v6708_v59  ;;  %v6754_v40 = vpack.c.bf16 %v3842_v41, %v6710_v54  ;;  %v1054_v7 = vld [vmem:[#allocation2 + $0x47] sm:$0xff]  ;;  %vm7620_vm15 = vmmov %vm7619_vm3  ;;  %v1180_v56 = vsel %vm6191_vm6, %v6167_v12, 0.0  ;;  %v1872_v15 = vsel %vm6623_vm9, %v6642_v4, 0.0 }
 0x164   : > { %5175 = vmatprep.mubr.msk.bf16.mxu0 %vm7620_vm15, %v1208_v50  ;;  %vm7621_vm8 = vmmov %vm7619_vm3  ;;  %5204 = vmatpush3.bf16.msra.mxu0 %v6160_v9  ;;  %v5813_v28 = vld [vmem:[%s7408_s2 + $0x60] sm:$0xff]   ;;  %v7636_v9 = vld [vmem:[#allocation25_spill] sm:$0xff]  ;;  %v1874_v1 = vsel %vm6627_vm0, %v6659_v38, 0.0 }
 0x165   : > { %5280 = vmatmul.mubr.msk.bf16.vlgmr.msra.gmra.mrb[24].mxu1 %vm7621_vm8, %v6131_v52  ;;  %vm7622_vm11 = vmmov %vm7619_vm3  ;;  %vm7623_vm3 = vnez %v7506_v26  ;;  %5205 = vmatprep.subr.bf16.mxu0 %v5812_v17  ;;  %v1209_v52 = vpack.c.bf16 %v6175_v20, %v1180_v56  ;;  %v7638_v12 = vld [vmem:[#allocation24_spill] sm:$0xff]  ;;  %v7660_v56 = vld [vmem:[#allocation14_spill] sm:$0xff] }
 0x166   : > { %5312 = vmatpush3.bf16.msra.mxu1 %v6305_v3  ;;  %5283 = vmatprep.mubr.msk.bf16.mxu1 %vm7622_vm11, %v6185_v24  ;;  %v1182_v50 = vsel %vm7623_vm3, %v1054_v7, 0.0  ;;  %vm7624_vm15 = vmmov %vm7621_vm8  ;;  %v7640_v20 = vld [vmem:[#allocation28_spill] sm:$0xff] }
 0x167   : > { %5313 = vmatprep.subr.bf16.mxu1 %v5810_v13  ;;  %v1210_v24 = vpack.c.bf16 %v6221_v48, %v1182_v50  ;;  %vm7625_vm11 = vmmov %vm7621_vm8  ;;  %v7644_v48 = vld [vmem:[#allocation31_spill] sm:$0xff]  ;;  %v2800_v3 = vld [vmem:[#allocation2 + $0x21] sm:$0xff] }
 0x168   : > { %5206 = vmatpush3.bf16.msra.mxu0 %v5812_v17  ;;  %vm7626_vm6 = vmmov %vm7621_vm8  ;;  %v7661_v50 = vld [vmem:[#allocation33_spill] sm:$0xff] }
 0x169   : > { %5239 = vmatprep.subr.bf16.mxu0 %v6058_v62  ;;  %vm7627_vm3 = vmmov %vm7626_vm6  ;;  %v7634_v62 = vld [vmem:[#allocation23_spill] sm:$0xff] }
 0x16a   : > { %5314 = vmatpush3.bf16.msra.mxu1 %v5810_v13  ;;  %vm7628_vm13 = vmmov %vm7627_vm3 }
 0x16b   : > { %5347 = vmatprep.subr.bf16.mxu1 %v5813_v28  ;;  %5176 = vmatmul.mubr.msk.bf16.gmra.mrb[36].mxu0 %vm7624_vm15, %v1209_v52  ;;  %vm7629_vm12 = vmmov %vm7627_vm3 }
 0x16c   : > { %5179 = vmatprep.mubr.msk.bf16.mxu0 %vm7621_vm8, %v1210_v24  ;;  %vm7630_vm15 = vmmov %vm7627_vm3 }
 0x16d   : > { %5284 = vmatmul.mubr.msk.bf16.gmra.mrb[28].mxu1 %vm7625_vm11, %v6200_v32  ;;  %vm7631_vm8 = vmmov %vm7627_vm3  ;;  %v7642_v32 = vld [vmem:[#allocation29_spill] sm:$0xff] }
 0x16e   : > { %5287 = vmatprep.mubr.msk.bf16.mxu1 %vm7626_vm6, %v6263_v31  ;;  %vm7632_vm11 = vmmov %vm7627_vm3  ;;  %v7649_v31 = vld [vmem:[#allocation38_spill] sm:$0xff] }
 0x16f   : > { %vm7633_vm6 = vmmov %vm7627_vm3 }
 0x173   : > { %5180 = vmatmul.mubr.msk.bf16.gmra.mrb[40].mxu0 %vm7627_vm3, %v6275_v46  ;;  %v7651_v46 = vld [vmem:[#allocation34_spill] sm:$0xff] }
 0x174   : > { %5183 = vmatprep.mubr.msk.bf16.mxu0 %vm7628_vm13, %v6284_v55  ;;  %vm7635_vm13 = vmmov %vm7627_vm3  ;;  %v1722_v55 = vld [vmem:[#allocation2 + $0x11] sm:$0xff] }
 0x175   : > { %5288 = vmatmul.mubr.msk.bf16.gmra.mrb[0].mxu1 %vm7629_vm12, %v6253_v19  ;;  %vm7637_vm12 = vmmov %vm7627_vm3  ;;  %v7646_v19 = vld [vmem:[#allocation30_spill] sm:$0xff] }
 0x176   : > { %5291 = vmatprep.mubr.msk.bf16.mxu1 %vm7630_vm15, %v6315_v43  ;;  %vm7639_vm15 = vmmov %vm7627_vm3  ;;  %v1721_v43 = vld [vmem:[#allocation2 + $0x9] sm:$0xff] }
 0x17b   : > { %5184 = vmatmul.mubr.msk.bf16.gmra.mrb[44].mxu0 %vm7631_vm8, %v6319_v60  ;;  %vm7641_vm8 = vmmov %vm7627_vm3  ;;  %v7671_v60 = vld [vmem:[#allocation39_spill] sm:$0xff] }
 0x17c   : > { %5187 = vmatprep.mubr.msk.bf16.mxu0 %vm7632_vm11, %v6335_v34  ;;  %vm7643_vm11 = vmmov %vm7627_vm3  ;;  %v2524_v34 = vld [vmem:[#allocation2 + $0x110] sm:$0xff] }
 0x17d   : > { %5292 = vmatmul.mubr.msk.bf16.gmra.mrb[4].mxu1 %vm7633_vm6, %v6322_v8  ;;  %vm7645_vm6 = vmmov %vm7627_vm3  ;;  %v1850_v8 = vsel %vm6177_vm4, %v1722_v55, 0.0 }
 0x17e   : > { %5295 = vmatprep.mubr.msk.bf16.mxu1 %vm7627_vm3, %v6365_v30  ;;  %v2799_v30 = vld [vmem:[#allocation2 + $0x19] sm:$0xff]  ;;  %v1881_v13 = vpack.c.bf16 %v1850_v8, %v1721_v43  ;;  %v6862_v43 = vld [vmem:[%s7408_s2 + $0x70] sm:$0xff]  }
 0x17f   : > { %v7672_v8 = vld [vmem:[#allocation40_spill] sm:$0xff] }
 0x183   : > { %5188 = vmatmul.mubr.msk.bf16.gmra.mrb[48].mxu0 %vm7635_vm13, %v7634_v62  ;;  %vm7647_vm13 = vmmov %vm7627_vm3 }
 0x184   : > { %5191 = vmatprep.mubr.msk.bf16.mxu0 %vm7637_vm12, %v7636_v9  ;;  %vm7648_vm12 = vmmov %vm7627_vm3 }
 0x185   : > { %5296 = vmatmul.mubr.msk.bf16.gmra.mrb[8].mxu1 %vm7639_vm15, %v7638_v12  ;;  %vm7650_vm15 = vmmov %vm7627_vm3  ;;  %v7664_v12 = vld [vmem:[#allocation44_spill] sm:$0xff] }
 0x186   : > { %5299 = vmatprep.mubr.msk.bf16.mxu1 %vm7641_vm8, %v7640_v20  ;;  %vm7652_vm8 = vmmov %vm7627_vm3 }
 0x18b   : > { %5192 = vmatmul.mubr.msk.bf16.gmra.mrb[52].mxu0 %vm7643_vm11, %v7642_v32  ;;  %vm7653_vm11 = vmmov %vm7627_vm3 }
 0x18c   : > { %5195 = vmatprep.mubr.msk.bf16.mxu0 %vm7645_vm6, %v7644_v48  ;;  %vm7655_vm6 = vmmov %vm7627_vm3  ;;  %v5814_v48 = vld [vmem:[%s7408_s2 + $0x68] sm:$0xff]  }
 0x18d   : > { %5300 = vmatmul.mubr.msk.bf16.gmra.mrb[12].mxu1 %vm7627_vm3, %v7646_v19  ;;  %v7666_v19 = vld [vmem:[#allocation35_spill] sm:$0xff] }
 0x18e   : > { %5303 = vmatprep.mubr.msk.bf16.mxu1 %vm7647_vm13, %v6484_v23  ;;  %v2832_v23 = vsel %vm6177_vm4, %v2800_v3, 0.0  ;;  %vm7656_vm13 = vmmov %vm7627_vm3  ;;  %vm7662_vm4 = vnez %v7661_v50  ;;  %v7679_v50 = vld [vmem:[#allocation42_spill] sm:$0xff] }
 0x18f   : > { %v2863_v17 = vpack.c.bf16 %v2832_v23, %v2799_v30  ;;  %v1854_v52 = vsel %vm7662_vm4, %v7660_v56, 0.0  ;;  %v7674_v23 = vld [vmem:[#allocation41_spill] sm:$0xff] }
 0x190   : > { %v1883_v20 = vpack.c.bf16 %v1854_v52, %v7664_v12  ;;  %v2842_v52 = vsel %vm6537_vm7, %v7679_v50, 0.0 }
 0x193   : > { %5196 = vmatmul.mubr.msk.bf16.gmra.mrb[56].mxu0 %vm7648_vm12, %v6488_v63  ;;  %v2523_v63 = vld [vmem:[#allocation2 + $0x108] sm:$0xff]  ;;  %vm7657_vm12 = vmmov %vm7627_vm3 }
 0x194   : > { %5199 = vmatprep.mubr.msk.bf16.mxu0 %vm7650_vm15, %v7649_v31  ;;  %v6824_v41 = vpack.c.bf16 %v2524_v34, %v2523_v63 }
 0x195   : > { %5304 = vmatmul.mubr.msk.bf16.gmra.mrb[16].mxu1 %vm7652_vm8, %v7651_v46  ;;  %vm7665_vm8 = vmmov %vm7627_vm3  ;;  %v7669_v46 = vld [vmem:[#allocation37_spill] sm:$0xff] }
 0x196   : > { %5307 = vmatprep.mubr.msk.bf16.mxu1 %vm7653_vm11, %v6586_v35  ;;  %v7658_v35 = vld [vmem:[#allocation32_spill] sm:$0xff]  ;;  %vm7667_vm11 = vmmov %vm7627_vm3 }
 0x197   : > { %vm7659_vm15 = vnez %v7658_v35 }
 0x198   : > { %v1852_v7 = vsel %vm7659_vm15, %v2800_v3, 0.0  ;;  %v2834_v24 = vsel %vm7659_vm15, %v7660_v56, 0.0  ;;  %v5821_v3 = vld [vmem:[%s7408_s2 + $0x30] sm:$0xff]   ;;  %vm7675_vm15 = vmmov %vm7627_vm3  ;;  %v1860_v56 = vsel %vm6537_vm7, %v7674_v23, 0.0 }
 0x199   : > { %v1882_v9 = vpack.c.bf16 %v1852_v7, %v2799_v30  ;;  %v2864_v32 = vpack.c.bf16 %v2834_v24, %v7664_v12  ;;  %v5822_v30 = vld [vmem:[%s7408_s2 + $0x38] sm:$0xff]   ;;  %v2844_v24 = vsel %vm6541_vm14, %v6600_v49, 0.0  ;;  %vm7687_vm7 = vmmov %vm7627_vm3 }
 0x19a   : > { %v2869_v12 = vpack.c.bf16 %v2844_v24, %v6598_v33 }
 0x19b   : > { %5200 = vmatmul.mubr.msk.bf16.gmra.mrb[60].mxu0 %vm7655_vm6, %v6590_v10  ;;  %v7663_v10 = vld [vmem:[#allocation36_spill] sm:$0xff]  ;;  %vm7668_vm6 = vmmov %vm7627_vm3 }
 0x19c   : > { %5207 = vmatprep.mubr.msk.bf16.mxu0 %vm7627_vm3, %v1881_v13  ;;  %v2836_v62 = vsel %vm7662_vm4, %v7663_v10, 0.0  ;;  %vm7676_vm4 = vmmov %vm7627_vm3 }
 0x19d   : > { %5308 = vmatmul.mubr.msk.bf16.gmra.mrb[20].mxu1 %vm7656_vm13, %v6824_v41  ;;  %v2865_v31 = vpack.c.bf16 %v2836_v62, %v7666_v19  ;;  %vm7670_vm13 = vnez %v7669_v46 }
 0x19e   : > { %5315 = vmatprep.mubr.msk.bf16.mxu1 %vm7657_vm12, %v2863_v17  ;;  %v1856_v55 = vsel %vm7670_vm13, %v7663_v10, 0.0  ;;  %vm7673_vm12 = vnez %v7672_v8  ;;  %v2838_v34 = vsel %vm7670_vm13, %v7671_v60, 0.0  ;;  %v1886_v10 = vpack.c.bf16 %v1860_v56, %v6592_v21  ;;  %vm7681_vm13 = vmmov %vm7627_vm3 }
 0x19f   : > { %v2840_v63 = vsel %vm7673_vm12, %v7674_v23, 0.0  ;;  %v1884_v13 = vpack.c.bf16 %v1856_v55, %v7666_v19  ;;  %v2866_v35 = vpack.c.bf16 %v2838_v34, %v6594_v25  ;;  %v2852_v8 = vsel %vm6608_vm2, %v6642_v4, 0.0 }
 0x1a0   : > { %v2867_v7 = vpack.c.bf16 %v2840_v63, %v6592_v21  ;;  %v2873_v23 = vpack.c.bf16 %v2852_v8, %v6640_v39 }
 0x1a3   : > { %5208 = vmatmul.mubr.msk.bf16.vlgmr.msra.gmra.mrb[32].mxu0 %vm7665_vm8, %v1882_v9  ;;  %vm7677_vm8 = vmmov %vm7627_vm3  ;;  %v2868_v9 = vpack.c.bf16 %v2842_v52, %v6596_v53 }
 0x1a4   : > { %5211 = vmatprep.mubr.msk.bf16.mxu0 %vm7667_vm11, %v1883_v20  ;;  %5240 = vmatpush3.bf16.msra.mxu0 %v5821_v3  ;;  %vm7678_vm11 = vmmov %vm7627_vm3  ;;  %v7684_v20 = vld [vmem:[#allocation49_spill] sm:$0xff] }
 0x1a5   : > { %5316 = vmatmul.mubr.msk.bf16.vlgmr.msra.gmra.mrb[24].mxu1 %vm7668_vm6, %v2864_v32  ;;  %5241 = vmatprep.subr.bf16.mxu0 %v5822_v30  ;;  %vm7680_vm6 = vmmov %vm7627_vm3  ;;  %v1866_v32 = vsel %vm6549_vm5, %v7684_v20, 0.0 }
 0x1a6   : > { %5348 = vmatpush3.bf16.msra.mxu1 %v5813_v28  ;;  %5319 = vmatprep.mubr.msk.bf16.mxu1 %vm7627_vm3, %v2865_v31  ;;  %v1858_v28 = vsel %vm7673_vm12, %v7671_v60, 0.0  ;;  %vm7682_vm12 = vmmov %vm7627_vm3  ;;  %v1888_v31 = vpack.c.bf16 %v1864_v6, %v6598_v33  ;;  %v1889_v46 = vpack.c.bf16 %v1866_v32, %v6636_v47  ;;  %v7691_v60 = vld [vmem:[#allocation52_spill] sm:$0xff]  ;;  %v3146_v32 = vld [vmem:[#allocation2 + $0x6f] sm:$0xff] }
 0x1a7   : > { %5349 = vmatprep.subr.bf16.mxu1 %v5814_v48  ;;  %v1885_v17 = vpack.c.bf16 %v1858_v28, %v6594_v25  ;;  %v1862_v25 = vsel %vm6541_vm14, %v7679_v50, 0.0  ;;  %vm7688_vm14 = vmmov %vm7627_vm3  ;;  %v1870_v33 = vsel %vm6608_vm2, %v7691_v60, 0.0  ;;  %v3144_v6 = vld [vmem:[#allocation2 + $0x5f] sm:$0xff] }
 0x1a8   : > { %5242 = vmatpush3.bf16.msra.mxu0 %v5822_v30  ;;  %v1887_v62 = vpack.c.bf16 %v1862_v25, %v6596_v53  ;;  %v2846_v53 = vsel %vm6545_vm10, %v7684_v20, 0.0  ;;  %v1891_v34 = vpack.c.bf16 %v1870_v33, %v6638_v16  ;;  %vm7693_vm10 = vmmov %vm7627_vm3 }
 0x1a9   : > { %v2870_v55 = vpack.c.bf16 %v2846_v53, %v6636_v47  ;;  %v2850_v47 = vsel %vm6604_vm1, %v7691_v60, 0.0  ;;  %v7724_v53 = vld [vmem:[#allocation17_spill] sm:$0xff] }
 0x1aa   : > { %5350 = vmatpush3.bf16.msra.mxu1 %v5814_v48  ;;  %v7686_v48 = vld [vmem:[#allocation51_spill] sm:$0xff]  ;;  %v2872_v30 = vpack.c.bf16 %v2850_v47, %v6638_v16  ;;  %v2854_v16 = vsel %vm6623_vm9, %v6659_v38, 0.0  ;;  %v3150_v47 = vld [vmem:[#allocation2 + $0x8f] sm:$0xff] }
 0x1ab   : > { %5383 = vmatprep.subr.bf16.mxu1 %v6862_v43  ;;  %5212 = vmatmul.mubr.msk.bf16.gmra.mrb[36].mxu0 %vm7675_vm15, %v1884_v13  ;;  %v2848_v19 = vsel %vm6549_vm5, %v7686_v48, 0.0  ;;  %vm7689_vm15 = vmmov %vm7627_vm3  ;;  %v1868_v3 = vsel %vm6604_vm1, %v7686_v48, 0.0  ;;  %v1892_v13 = vpack.c.bf16 %v1872_v15, %v6640_v39  ;;  %v7739_v15 = vld [vmem:[#allocation20_spill] sm:$0xff] }
 0x1ac   : > { %5215 = vmatprep.mubr.msk.bf16.mxu0 %vm7676_vm4, %v1885_v17  ;;  %v2871_v49 = vpack.c.bf16 %v2848_v19, %v6617_v57  ;;  %vm7690_vm4 = vmmov %vm7627_vm3  ;;  %v1890_v28 = vpack.c.bf16 %v1868_v3, %v6617_v57  ;;  %v7696_v57 = vld [vmem:[#allocation54_spill] sm:$0xff]  ;;  %v1893_v17 = vpack.c.bf16 %v1874_v1, %v6674_v44  ;;  %v7733_v3 = vld [vmem:[#allocation16_spill] sm:$0xff] }
 0x1ad   : > { %5320 = vmatmul.mubr.msk.bf16.gmra.mrb[28].mxu1 %vm7677_vm8, %v2866_v35  ;;  %vm7692_vm5 = vmmov %vm7627_vm3  ;;  %v2856_v63 = vsel %vm6627_vm0, %v7696_v57, 0.0  ;;  %v2874_v35 = vpack.c.bf16 %v2854_v16, %v6674_v44  ;;  %vm7702_vm0 = vnez %v7606_v0 }
 0x1ae   : > { %5323 = vmatprep.mubr.msk.bf16.mxu1 %vm7678_vm11, %v2867_v7  ;;  %vm7694_vm8 = vmmov %vm7627_vm3  ;;  %v2875_v4 = vpack.c.bf16 %v2856_v63, %v6676_v36  ;;  %v7698_v7 = vld [vmem:[#allocation6_spill] sm:$0xff]  ;;  %v1876_v18 = vsel %vm7702_vm0, %v7696_v57, 0.0  ;;  %v2858_v39 = vsel %vm7702_vm0, %v6663_v22, 0.0 }
 0x1af   : > { %vm7695_vm11 = vmmov %vm7627_vm3  ;;  %v661_v56 = vadd.s32 248, %v7698_v7  ;;  %v1894_v50 = vpack.c.bf16 %v1876_v18, %v6676_v36  ;;  %v2876_v52 = vpack.c.bf16 %v2858_v39, %v6690_v29  ;;  %v3154_v57 = vld [vmem:[#allocation2 + $0xaf] sm:$0xff] }
 0x1b0   : > { %vm7697_vm1 = vmmov %vm7627_vm3  ;;  %v3158_v39 = vld [vmem:[#allocation2 + $0xcf] sm:$0xff] }
 0x1b1   : > { %vm7699_vm2 = vmmov %vm7697_vm1  ;;  %v883_v38 = vand.u32 15, %v661_v56  ;;  %v7745_v56 = vld [vmem:[#allocation22_spill] sm:$0xff] }
 0x1b2   : > { %vm7701_vm9 = vmmov %vm7697_vm1 }
 0x1b3   : > { %5216 = vmatmul.mubr.msk.bf16.gmra.mrb[40].mxu0 %vm7680_vm6, %v1886_v10  ;;  %vm7700_vm6 = vmmov %vm7697_vm1 }
 0x1b4   : > { %5219 = vmatprep.mubr.msk.bf16.mxu0 %vm7627_vm3, %v1887_v62  ;;  %vm7703_vm3 = vnez %v7608_v61  ;;  %v7714_v62 = vld [vmem:[#allocation8_spill] sm:$0xff]  ;;  %vm7725_vm0 = vmmov %vm7697_vm1 }
 0x1b5   : > { %5324 = vmatmul.mubr.msk.bf16.gmra.mrb[0].mxu1 %vm7681_vm13, %v2868_v9  ;;  %v1878_v14 = vsel %vm7703_vm3, %v6663_v22, 0.0  ;;  %v2860_v44 = vsel %vm7703_vm3, %v6692_v5, 0.0  ;;  %vm7704_vm13 = vmmov %vm7697_vm1  ;;  %v7716_v9 = vld [vmem:[#allocation9_spill] sm:$0xff]  ;;  %vm7726_vm3 = vnez %v7506_v26  ;;  %v3151_v26 = vld [vmem:[#allocation2 + $0x97] sm:$0xff] }
 0x1b6   : > { %5327 = vmatprep.mubr.msk.bf16.mxu1 %vm7682_vm12, %v2869_v12  ;;  %v1895_v25 = vpack.c.bf16 %v1878_v14, %v6690_v29  ;;  %v2877_v24 = vpack.c.bf16 %v2860_v44, %v6708_v59  ;;  %vm6983_vm12 = vcmp.lt.s32.totalorder %v883_v38, 15  ;;  %v7711_v29 = vld [vmem:[#allocation7_spill] sm:$0xff] }
 0x1b7   : > { %v1880_v0 = vsel %vm6983_vm12, %v6692_v5, 0.0  ;;  %v2862_v61 = vsel %vm6983_vm12, %v6694_v37, 0.0  ;;  %v5816_v5 = vld [vmem:[%s7408_s2 + $0x78] sm:$0xff]  }
 0x1b8   : > { %v1896_v22 = vpack.c.bf16 %v1880_v0, %v6708_v59  ;;  %v2878_v36 = vpack.c.bf16 %v2862_v61, %v6710_v54  ;;  %v7718_v59 = vld [vmem:[#allocation11_spill] sm:$0xff]  ;;  %v7719_v54 = vld [vmem:[#allocation13_spill] sm:$0xff] }
 0x1b9   : > { %v3143_v37 = vld [vmem:[#allocation2 + $0x57] sm:$0xff] }
 0x1ba   : > { %v7721_v12 = vld [vmem:[#allocation15_spill] sm:$0xff] }
 0x1bb   : > { %5220 = vmatmul.mubr.msk.bf16.gmra.mrb[44].mxu0 %vm7687_vm7, %v1888_v31  ;;  %vm7707_vm7 = vmmov %vm7697_vm1  ;;  %v3147_v31 = vld [vmem:[#allocation2 + $0x77] sm:$0xff] }
 0x1bc   : > { %5223 = vmatprep.mubr.msk.bf16.mxu0 %vm7688_vm14, %v1889_v46  ;;  %vm7708_vm14 = vmmov %vm7697_vm1  ;;  %v3148_v46 = vld [vmem:[#allocation2 + $0x7f] sm:$0xff]  ;;  %v3159_v44 = vld [vmem:[#allocation2 + $0xd7] sm:$0xff] }
 0x1bd   : > { %5328 = vmatmul.mubr.msk.bf16.gmra.mrb[4].mxu1 %vm7689_vm15, %v2870_v55  ;;  %vm7709_vm15 = vmmov %vm7697_vm1  ;;  %v7731_v55 = vld [vmem:[#allocation12_spill] sm:$0xff]  ;;  %v7750_v0 = vld [vmem:[#allocation27_spill] sm:$0xff] }
 0x1be   : > { %5331 = vmatprep.mubr.msk.bf16.mxu1 %vm7690_vm4, %v2871_v49  ;;  %vm7710_vm4 = vmmov %vm7697_vm1 }
 0x1c3   : > { %5224 = vmatmul.mubr.msk.bf16.gmra.mrb[48].mxu0 %vm7692_vm5, %v1890_v28  ;;  %vm7712_vm5 = vmmov %vm7697_vm1  ;;  %v3153_v28 = vld [vmem:[#allocation2 + $0xa7] sm:$0xff] }
 0x1c4   : > { %5227 = vmatprep.mubr.msk.bf16.mxu0 %vm7693_vm10, %v1891_v34  ;;  %vm7713_vm10 = vmmov %vm7697_vm1  ;;  %v3152_v34 = vld [vmem:[#allocation2 + $0x9f] sm:$0xff] }
 0x1c5   : > { %5332 = vmatmul.mubr.msk.bf16.gmra.mrb[8].mxu1 %vm7694_vm8, %v2872_v30  ;;  %vm7715_vm8 = vmmov %vm7697_vm1  ;;  %v7737_v30 = vld [vmem:[#allocation19_spill] sm:$0xff] }
 0x1c6   : > { %5335 = vmatprep.mubr.msk.bf16.mxu1 %vm7695_vm11, %v2873_v23  ;;  %vm7717_vm11 = vmmov %vm7697_vm1 }
 0x1cb   : > { %5228 = vmatmul.mubr.msk.bf16.gmra.mrb[52].mxu0 %vm7697_vm1, %v1892_v13  ;;  %v3155_v13 = vld [vmem:[#allocation2 + $0xb7] sm:$0xff] }
 0x1cc   : > { %5231 = vmatprep.mubr.msk.bf16.mxu0 %vm7699_vm2, %v1893_v17  ;;  %vm7720_vm2 = vmmov %vm7697_vm1  ;;  %v3157_v17 = vld [vmem:[#allocation2 + $0xc7] sm:$0xff] }
 0x1cd   : > { %5336 = vmatmul.mubr.msk.bf16.gmra.mrb[12].mxu1 %vm7700_vm6, %v2874_v35  ;;  %vm7722_vm6 = vmmov %vm7697_vm1  ;;  %v3156_v35 = vld [vmem:[#allocation2 + $0xbf] sm:$0xff] }
 0x1ce   : > { %5339 = vmatprep.mubr.msk.bf16.mxu1 %vm7701_vm9, %v2875_v4  ;;  %vm7723_vm9 = vnez %v7508_v27  ;;  %v3149_v27 = vld [vmem:[#allocation2 + $0x87] sm:$0xff] }
 0x1cf   : > { %v3175_v20 = vsel %vm7723_vm9, %v3143_v37, 0.0  ;;  %v7743_v4 = vld [vmem:[#allocation21_spill] sm:$0xff]  ;;  %vm7747_vm9 = vmmov %vm7725_vm0 }
 0x1d0   : > { %v3204_v21 = vpack.c.bf16 %v3144_v6, %v3175_v20  ;;  %v3475_v20 = vld [vmem:[#allocation2 + $0x28] sm:$0xff] }
 0x1d3   : > { %5232 = vmatmul.mubr.msk.bf16.gmra.mrb[56].mxu0 %vm7704_vm13, %v1894_v50  ;;  %vm7729_vm13 = vmmov %vm7725_vm0  ;;  %v3161_v50 = vld [vmem:[#allocation2 + $0xe7] sm:$0xff] }
 0x1d4   : > { %5235 = vmatprep.mubr.msk.bf16.mxu0 %vm7707_vm7, %v1895_v25  ;;  %vm7730_vm7 = vmmov %vm7725_vm0  ;;  %v3160_v25 = vld [vmem:[#allocation2 + $0xdf] sm:$0xff] }
 0x1d5   : > { %5340 = vmatmul.mubr.msk.bf16.gmra.mrb[16].mxu1 %vm7708_vm14, %v2876_v52  ;;  %vm7732_vm14 = vnez %v7731_v55  ;;  %v7748_v52 = vld [vmem:[#allocation26_spill] sm:$0xff] }
 0x1d6   : > { %5343 = vmatprep.mubr.msk.bf16.mxu1 %vm7709_vm15, %v2877_v24  ;;  %v3179_v49 = vsel %vm7732_vm14, %v3147_v31, 0.0  ;;  %vm7734_vm15 = vnez %v7733_v3  ;;  %vm7753_vm14 = vmmov %vm7725_vm0  ;;  %v5818_v31 = vld [vmem:[%s7408_s2 + $0x88] sm:$0xff]   ;;  %v3484_v55 = vld [vmem:[#allocation2 + $0x70] sm:$0xff] }
 0x1d7   : > { %v3181_v60 = vsel %vm7734_vm15, %v3149_v27, 0.0  ;;  %v3206_v33 = vpack.c.bf16 %v3148_v46, %v3179_v49  ;;  %vm7755_vm15 = vmmov %vm7725_vm0  ;;  %v3482_v46 = vld [vmem:[#allocation2 + $0x60] sm:$0xff]  ;;  %v3481_v49 = vld [vmem:[#allocation2 + $0x58] sm:$0xff] }
 0x1d8   : > { %v3207_v8 = vpack.c.bf16 %v3150_v47, %v3181_v60  ;;  %v3510_v3 = vpack.c.bf16 %v3482_v46, %v3481_v49  ;;  %v3483_v60 = vld [vmem:[#allocation2 + $0x68] sm:$0xff]  ;;  %v3486_v47 = vld [vmem:[#allocation2 + $0x80] sm:$0xff] }
 0x1db   : > { %5236 = vmatmul.mubr.msk.bf16.gmra.mrb[60].mxu0 %vm7710_vm4, %v1896_v22  ;;  %vm7735_vm4 = vmmov %vm7725_vm0 }
 0x1dc   : > { %5243 = vmatprep.mubr.msk.bf16.mxu0 %vm7712_vm5, %v7711_v29  ;;  %vm7736_vm5 = vmmov %vm7725_vm0 }
 0x1dd   : > { %5344 = vmatmul.mubr.msk.bf16.gmra.mrb[20].mxu1 %vm7713_vm10, %v2878_v36  ;;  %vm7738_vm10 = vnez %v7737_v30  ;;  %v3162_v36 = vld [vmem:[#allocation2 + $0xef] sm:$0xff]  ;;  %v3490_v30 = vld [vmem:[#allocation2 + $0xa0] sm:$0xff] }
 0x1de   : > { %5351 = vmatprep.mubr.msk.bf16.mxu1 %vm7715_vm8, %v7714_v62  ;;  %v3183_v23 = vsel %vm7738_vm10, %v3151_v26, 0.0  ;;  %vm7740_vm8 = vnez %v7739_v15  ;;  %v7754_v62 = vld [vmem:[#allocation50_spill] sm:$0xff]  ;;  %vm7760_vm10 = vmmov %vm7725_vm0  ;;  %v3485_v26 = vld [vmem:[#allocation2 + $0x78] sm:$0xff] }
 0x1df   : > { %v3185_v1 = vsel %vm7740_vm8, %v3153_v28, 0.0  ;;  %v3208_v16 = vpack.c.bf16 %v3152_v34, %v3183_v23  ;;  %vm7761_vm8 = vmmov %vm7725_vm0  ;;  %v3512_v28 = vpack.c.bf16 %v3486_v47, %v3485_v26  ;;  %v3487_v34 = vld [vmem:[#allocation2 + $0x88] sm:$0xff]  ;;  %v3492_v23 = vld [vmem:[#allocation2 + $0xb0] sm:$0xff] }
 0x1e0   : > { %v3209_v63 = vpack.c.bf16 %v3154_v57, %v3185_v1  ;;  %v3489_v15 = vld [vmem:[#allocation2 + $0x98] sm:$0xff] }
 0x1e1   : > { %v3514_v1 = vpack.c.bf16 %v3490_v30, %v3489_v15 }
 0x1e3   : > { %5244 = vmatmul.mubr.msk.bf16.vlgmr.msra.gmra.mrb[32].mxu0 %vm7717_vm11, %v7716_v9  ;;  %vm7741_vm11 = vmmov %vm7725_vm0  ;;  %v7756_v9 = vld [vmem:[#allocation53_spill] sm:$0xff] }
 0x1e4   : > { %5247 = vmatprep.mubr.msk.bf16.mxu0 %vm7697_vm1, %v7718_v59  ;;  %vm7742_vm1 = vmmov %vm7725_vm0  ;;  %v3168_v59 = vld [vmem:[#allocation2 + $0x11f] sm:$0xff] }
 0x1e5   : > { %5352 = vmatmul.mubr.msk.bf16.vlgmr.msra.gmra.mrb[24].mxu1 %vm7720_vm2, %v7719_v54  ;;  %vm7744_vm2 = vnez %v7743_v4  ;;  %v7758_v54 = vld [vmem:[#allocation43_spill] sm:$0xff] }
 0x1e6   : > { %5384 = vmatpush3.bf16.msra.mxu1 %v6862_v43  ;;  %5355 = vmatprep.mubr.msk.bf16.mxu1 %vm7722_vm6, %v7721_v12  ;;  %v7727_v43 = vld [vmem:[#allocation18_spill] sm:$0xff]  ;;  %v3187_v7 = vsel %vm7744_vm2, %v3155_v13, 0.0  ;;  %vm7746_vm6 = vnez %v7745_v56  ;;  %vm7764_vm2 = vmmov %vm7725_vm0 }
 0x1e7   : > { %5385 = vmatprep.subr.bf16.mxu1 %v5816_v5  ;;  %v7728_v48 = vsel %vm7726_vm3, %v7727_v43, 0.0  ;;  %v3189_v18 = vsel %vm7746_vm6, %v3157_v17, 0.0  ;;  %v3210_v14 = vpack.c.bf16 %v3156_v35, %v3187_v7  ;;  %vm7749_vm3 = vnez %v7748_v52  ;;  %v3476_v12 = vld [vmem:[#allocation2 + $0x30] sm:$0xff]  ;;  %v3477_v43 = vld [vmem:[#allocation2 + $0x38] sm:$0xff]  ;;  %vm7765_vm6 = vmmov %vm7725_vm0 }
 0x1e8   : > { %v3205_v19 = vpack.c.bf16 %v3146_v32, %v7728_v48  ;;  %v3211_v38 = vpack.c.bf16 %v3158_v39, %v3189_v18  ;;  %v3191_v24 = vsel %vm7749_vm3, %v3159_v44, 0.0  ;;  %v3478_v32 = vld [vmem:[#allocation2 + $0x40] sm:$0xff]  ;;  %vm7767_vm3 = vmmov %vm7725_vm0  ;;  %v3496_v13 = vld [vmem:[#allocation2 + $0xd0] sm:$0xff] }
 0x1e9   : > { %v3212_v22 = vpack.c.bf16 %v3160_v25, %v3191_v24  ;;  %v3508_v48 = vpack.c.bf16 %v3478_v32, %v3477_v43  ;;  %v3493_v17 = vld [vmem:[#allocation2 + $0xb8] sm:$0xff]  ;;  %v5819_v35 = vld [vmem:[%s7409_s3] sm:$0xff]   ;;  %v3495_v7 = vld [vmem:[#allocation2 + $0xc8] sm:$0xff] }
 0x1ea   : > { %5386 = vmatpush3.bf16.msra.mxu1 %v5816_v5  ;;  %v3167_v5 = vld [vmem:[#allocation2 + $0x117] sm:$0xff]  ;;  %v3517_v56 = vpack.c.bf16 %v3496_v13, %v3495_v7  ;;  %5455 = vmatprep.subr.bf16.mxu0 %v5819_v35  ;;  %v3498_v18 = vld [vmem:[#allocation2 + $0xe0] sm:$0xff]  ;;  %v3499_v44 = vld [vmem:[#allocation2 + $0xe8] sm:$0xff] }
 0x1eb   : > { %5419 = vmatprep.subr.bf16.mxu1 %v7019_v45  ;;  %5248 = vmatmul.mubr.msk.bf16.gmra.mrb[36].mxu0 %vm7725_vm0, %v7724_v53  ;;  %v3480_v53 = vld [vmem:[#allocation2 + $0x50] sm:$0xff]  ;;  %v3497_v39 = vld [vmem:[#allocation2 + $0xd8] sm:$0xff]  ;;  %v3502_v25 = vld [vmem:[#allocation2 + $0x100] sm:$0xff] }
 0x1ec   : > { %5456 = vmatpush3.bf16.msra.mxu0 %v5819_v35  ;;  %v3501_v52 = vld [vmem:[#allocation2 + $0xf8] sm:$0xff]  ;;  %v3812_v43 = vld [vmem:[#allocation2 + $0x121] sm:$0xff] }
 0x1ed   : > { %5356 = vmatmul.mubr.msk.bf16.gmra.mrb[28].mxu1 %vm7729_vm13, %v3204_v21  ;;  %vm7751_vm13 = vnez %v7750_v0  ;;  %v3507_v21 = vpack.c.bf16 %v3476_v12, %v3475_v20  ;;  %v3520_v24 = vpack.c.bf16 %v3502_v25, %v3501_v52  ;;  %v3505_v0 = vld [vmem:[#allocation2 + $0x118] sm:$0xff] }
 0x1ee   : > { %5359 = vmatprep.mubr.msk.bf16.mxu1 %vm7730_vm7, %v3205_v19  ;;  %v3193_v61 = vsel %vm7751_vm13, %v3161_v50, 0.0  ;;  %vm7752_vm7 = vmmov %vm7725_vm0  ;;  %v3479_v19 = vld [vmem:[#allocation2 + $0x48] sm:$0xff] }
 0x1ef   : > { %v3213_v29 = vpack.c.bf16 %v3162_v36, %v3193_v61  ;;  %v3509_v27 = vpack.c.bf16 %v3480_v53, %v3479_v19  ;;  %vm7768_vm13 = vmmov %vm7725_vm0  ;;  %v3506_v61 = vld [vmem:[#allocation2 + $0x120] sm:$0xff]  ;;  %v7776_v36 = vld [vmem:[#allocation47_spill] sm:$0xff] }
 0x1f5   : > { %5360 = vmatmul.mubr.msk.bf16.gmra.mrb[0].mxu1 %vm7735_vm4, %v3206_v33  ;;  %vm7757_vm4 = vmmov %vm7725_vm0  ;;  %v3511_v33 = vpack.c.bf16 %v3484_v55, %v3483_v60 }
 0x1f6   : > { %5363 = vmatprep.mubr.msk.bf16.mxu1 %vm7736_vm5, %v3207_v8  ;;  %vm7759_vm5 = vnez %v7758_v54  ;;  %v3488_v8 = vld [vmem:[#allocation2 + $0x90] sm:$0xff]  ;;  %v7789_v54 = vld [vmem:[#allocation60_spill] sm:$0xff] }
 0x1f7   : > { %v3199_v37 = vsel %vm7759_vm5, %v3167_v5, 0.0  ;;  %vm7773_vm5 = vmmov %vm7725_vm0  ;;  %v7782_v5 = vld [vmem:[#allocation56_spill] sm:$0xff] }
 0x1f8   : > { %v3216_v6 = vpack.c.bf16 %v3168_v59, %v3199_v37  ;;  %v7787_v59 = vld [vmem:[#allocation59_spill] sm:$0xff]  ;;  %v7791_v37 = vld [vmem:[#allocation61_spill] sm:$0xff] }
 0x1fd   : > { %5364 = vmatmul.mubr.msk.bf16.gmra.mrb[4].mxu1 %vm7741_vm11, %v3208_v16  ;;  %vm7762_vm11 = vmmov %vm7725_vm0  ;;  %v3491_v16 = vld [vmem:[#allocation2 + $0xa8] sm:$0xff] }
 0x1fe   : > { %5367 = vmatprep.mubr.msk.bf16.mxu1 %vm7742_vm1, %v3209_v63  ;;  %vm7763_vm1 = vmmov %vm7725_vm0  ;;  %v3515_v57 = vpack.c.bf16 %v3492_v23, %v3491_v16  ;;  %v3494_v63 = vld [vmem:[#allocation2 + $0xc0] sm:$0xff] }
 0x1ff   : > { %v3516_v4 = vpack.c.bf16 %v3494_v63, %v3493_v17  ;;  %v5820_v63 = vld [vmem:[%s7409_s3 + $0x8] sm:$0xff]   ;;  %v7174_v17 = vld [vmem:[%s7411_s5] ss:$0 sm:$0xff] }
 0x200   : > { %5457 = vmatprep.subr.bf16.mxu0 %v5820_v63 }
 0x201   : > { %5458 = vmatpush3.bf16.msra.mxu0 %v5820_v63 }
 0x205   : > { %5368 = vmatmul.mubr.msk.bf16.gmra.mrb[8].mxu1 %vm7747_vm9, %v3210_v14  ;;  %vm7766_vm9 = vmmov %vm7725_vm0  ;;  %v3500_v14 = vld [vmem:[#allocation2 + $0xf0] sm:$0xff] }
 0x206   : > { %5371 = vmatprep.mubr.msk.bf16.mxu1 %vm7725_vm0, %v3211_v38  ;;  %v3518_v38 = vpack.c.bf16 %v3498_v18, %v3497_v39  ;;  %v3519_v50 = vpack.c.bf16 %v3500_v14, %v3499_v44 }
 0x20d   : > { %5372 = vmatmul.mubr.msk.bf16.gmra.mrb[12].mxu1 %vm7752_vm7, %v3212_v22  ;;  %vm7769_vm7 = vmmov %vm7725_vm0  ;;  %v3522_v22 = vpack.c.bf16 %v3506_v61, %v3505_v0 }
 0x20e   : > { %5375 = vmatprep.mubr.msk.bf16.mxu1 %vm7753_vm14, %v3213_v29  ;;  %vm7770_vm14 = vmmov %vm7725_vm0  ;;  %v7778_v29 = vld [vmem:[#allocation48_spill] sm:$0xff] }
 0x215   : > { %5376 = vmatmul.mubr.msk.bf16.gmra.mrb[16].mxu1 %vm7755_vm15, %v7754_v62  ;;  %vm7771_vm15 = vmmov %vm7725_vm0  ;;  %v7780_v62 = vld [vmem:[#allocation55_spill] sm:$0xff] }
 0x216   : > { %5379 = vmatprep.mubr.msk.bf16.mxu1 %vm7757_vm4, %v7756_v9  ;;  %vm7772_vm4 = vmmov %vm7725_vm0  ;;  %v7784_v9 = vld [vmem:[#allocation57_spill] sm:$0xff] }
 0x21d   : > { %5380 = vmatmul.mubr.msk.bf16.gmra.mrb[20].mxu1 %vm7760_vm10, %v3216_v6  ;;  %vm7774_vm10 = vmmov %vm7725_vm0 }
 0x21e   : > { %5387 = vmatprep.mubr.msk.bf16.mxu1 %vm7761_vm8, %v3507_v21  ;;  %vm7775_vm8 = vmmov %vm7725_vm0 }
 0x225   : > { %5388 = vmatmul.mubr.msk.bf16.vlgmr.msra.gmra.mrb[24].mxu1 %vm7762_vm11, %v3508_v48  ;;  %vm7777_vm11 = vmmov %vm7725_vm0  ;;  %v3811_v48 = vld [vmem:[#allocation2 + $0x119] sm:$0xff] }
 0x226   : > { %5420 = vmatpush3.bf16.msra.mxu1 %v7019_v45  ;;  %5391 = vmatprep.mubr.msk.bf16.mxu1 %vm7763_vm1, %v3509_v27  ;;  %v3513_v45 = vpack.c.bf16 %v3488_v8, %v3487_v34  ;;  %vm7779_vm1 = vmmov %vm7725_vm0 }
 0x227   : > { %5421 = vmatprep.subr.bf16.mxu1 %v5818_v31 }
 0x22a   : > { %5422 = vmatpush3.bf16.msra.mxu1 %v5818_v31 }
 0x22d   : > { %5392 = vmatmul.mubr.msk.bf16.gmra.mrb[28].mxu1 %vm7764_vm2, %v3510_v3  ;;  %vm7781_vm2 = vmmov %vm7725_vm0 }
 0x22e   : > { %5395 = vmatprep.mubr.msk.bf16.mxu1 %vm7765_vm6, %v3511_v33  ;;  %vm7783_vm6 = vmmov %vm7725_vm0 }
 0x235   : > { %5396 = vmatmul.mubr.msk.bf16.gmra.mrb[0].mxu1 %vm7766_vm9, %v3512_v28  ;;  %vm7785_vm9 = vmmov %vm7725_vm0 }
 0x236   : > { %5399 = vmatprep.mubr.msk.bf16.mxu1 %vm7725_vm0, %v3513_v45 }
 0x23d   : > { %5400 = vmatmul.mubr.msk.bf16.gmra.mrb[4].mxu1 %vm7767_vm3, %v3514_v1  ;;  %vm7788_vm3 = vmmov %vm7725_vm0 }
 0x23e   : > { %5403 = vmatprep.mubr.msk.bf16.mxu1 %vm7768_vm13, %v3515_v57  ;;  %vm7790_vm13 = vmmov %vm7725_vm0 }
 0x245   : > { %5404 = vmatmul.mubr.msk.bf16.gmra.mrb[8].mxu1 %vm7769_vm7, %v3516_v4  ;;  %vm7792_vm7 = vmmov %vm7725_vm0 }
 0x246   : > { %5407 = vmatprep.mubr.msk.bf16.mxu1 %vm7770_vm14, %v3517_v56  ;;  %vm7793_vm14 = vmmov %vm7725_vm0 }
 0x24d   : > { %5408 = vmatmul.mubr.msk.bf16.gmra.mrb[12].mxu1 %vm7771_vm15, %v3518_v38  ;;  %vm7794_vm15 = vmmov %vm7725_vm0 }
 0x24e   : > { %5411 = vmatprep.mubr.msk.bf16.mxu1 %vm7772_vm4, %v3519_v50  ;;  %vm7795_vm4 = vmmov %vm7725_vm0 }
 0x255   : > { %5412 = vmatmul.mubr.msk.bf16.gmra.mrb[16].mxu1 %vm7773_vm5, %v3520_v24  ;;  %vm7796_vm5 = vmmov %vm7725_vm0 }
 0x256   : > { %5415 = vmatprep.mubr.msk.bf16.mxu1 %vm7774_vm10, %v6824_v41  ;;  %v7786_v41 = vld [vmem:[#allocation58_spill] sm:$0xff]  ;;  %vm7797_vm10 = vmmov %vm7725_vm0 }
 0x25d   : > { %5416 = vmatmul.mubr.msk.bf16.gmra.mrb[20].mxu1 %vm7775_vm8, %v3522_v22  ;;  %vm7798_vm8 = vmmov %vm7725_vm0 }
 0x25e   : > { %5423 = vmatprep.mubr.msk.bf16.mxu1 %vm7777_vm11, %v7776_v36  ;;  %vm7799_vm11 = vmmov %vm7725_vm0 }
 0x265   : > { %5424 = vmatmul.mubr.msk.bf16.vlgmr.msra.gmra.mrb[24].mxu1 %vm7779_vm1, %v7778_v29  ;;  %vm7801_vm1 = vmmov %vm7725_vm0 }
 0x266   : > { %5427 = vmatprep.mubr.msk.bf16.mxu1 %vm7781_vm2, %v7780_v62  ;;  %vm7802_vm2 = vmmov %vm7725_vm0 }
 0x26d   : > { %5428 = vmatmul.mubr.msk.bf16.gmra.mrb[28].mxu1 %vm7783_vm6, %v7782_v5  ;;  %vm7803_vm6 = vmmov %vm7725_vm0 }
 0x26e   : > { %5431 = vmatprep.mubr.msk.bf16.mxu1 %vm7785_vm9, %v7784_v9  ;;  %vm7804_vm9 = vmmov %vm7725_vm0 }
 0x275   : > { %5432 = vmatmul.mubr.msk.bf16.gmra.mrb[0].mxu1 %vm7725_vm0, %v7786_v41 }
 0x276   : > { %5435 = vmatprep.mubr.msk.bf16.mxu1 %vm7788_vm3, %v7787_v59  ;;  %vm7805_vm3 = vmmov %vm7725_vm0 }
 0x27d   : > { %5436 = vmatmul.mubr.msk.bf16.gmra.mrb[4].mxu1 %vm7790_vm13, %v7789_v54  ;;  %vm7806_vm13 = vmmov %vm7725_vm0 }
 0x27e   : > { %5439 = vmatprep.mubr.msk.bf16.mxu1 %vm7792_vm7, %v7791_v37  ;;  %vm7807_vm7 = vmmov %vm7725_vm0 }
 0x285   : > { %5440 = vmatmul.mubr.msk.bf16.gmra.mrb[8].mxu1 %vm7793_vm14, %v6725_v11  ;;  %vm7808_vm14 = vmmov %vm7725_vm0 }
 0x286   : > { %5443 = vmatprep.mubr.msk.bf16.mxu1 %vm7794_vm15, %v6728_v51  ;;  %v7109_v12 = vpop.f32.mrb[40].mxu0  ;;  %vm7809_vm15 = vmmov %vm7725_vm0 }
 0x287   : > { %v7111_v6 = vpop.f32.mrb[41].mxu0 }
 0x288   : > { %v7113_v20 = vpop.f32.mrb[42].mxu0 }
 0x289   : > { %v7115_v21 = vpop.f32.mrb[43].mxu0 }
 0x28d   : > { %5444 = vmatmul.mubr.msk.bf16.gmra.mrb[12].mxu1 %vm7795_vm4, %v6731_v42  ;;  %v3844_v42 = vsel %vm6983_vm12, %v3812_v43, 0.0  ;;  %vm7800_vm12 = vmmov %vm7725_vm0 }
 0x28e   : > { %5447 = vmatprep.mubr.msk.bf16.mxu1 %vm7796_vm5, %v6734_v2  ;;  %v7121_v32 = vpop.f32.mrb[44].mxu0  ;;  %v3860_v27 = vpack.c.bf16 %v3844_v42, %v3811_v48  ;;  %vm7810_vm4 = vmmov %vm7725_vm0 }
 0x28f   : > { %v7123_v11 = vpop.f32.mrb[45].mxu0  ;;  %vm7811_vm5 = vmmov %vm7725_vm0 }
 0x290   : > { %v7125_v53 = vpop.f32.mrb[46].mxu0 }
 0x291   : > { %v7127_v51 = vpop.f32.mrb[47].mxu0 }
 0x295   : > { %5448 = vmatmul.mubr.msk.bf16.gmra.mrb[16].mxu1 %vm7797_vm10, %v6751_v58  ;;  %vm7812_vm10 = vmmov %vm7725_vm0 }
 0x296   : > { %5451 = vmatprep.mubr.msk.bf16.mxu1 %vm7798_vm8, %v6754_v40  ;;  %v7135_v2 = vpop.f32.mrb[48].mxu0  ;;  %vm7813_vm8 = vmmov %vm7725_vm0 }
 0x297   : > { %v7137_v19 = vpop.f32.mrb[49].mxu0 }
 0x298   : > { %v7139_v31 = vpop.f32.mrb[50].mxu0 }
 0x299   : > { %v7141_v46 = vpop.f32.mrb[51].mxu0 }
 0x29d   : > { %5452 = vmatmul.mubr.msk.bf16.gmra.mrb[20].mxu1 %vm7799_vm11, %v3860_v27  ;;  %vm7814_vm11 = vmmov %vm7725_vm0 }
 0x29e   : > { %v7144_v55 = vpop.f32.mrb[52].mxu0 }
 0x29f   : > { %v7146_v58 = vpop.f32.mrb[53].mxu0 }
 0x2a0   : > { %v7148_v40 = vpop.f32.mrb[54].mxu0 }
 0x2a1   : > { %v7150_v49 = vpop.f32.mrb[55].mxu0 }
 0x2a6   : > { %v7152_v10 = vpop.f32.mrb[56].mxu0 }
 0x2a7   : > { %v7154_v3 = vpop.f32.mrb[57].mxu0 }
 0x2a8   : > { %v7156_v60 = vpop.f32.mrb[58].mxu0 }
 0x2a9   : > { %v7158_v33 = vpop.f32.mrb[59].mxu0 }
 0x2ae   : > { %v7160_v47 = vpop.f32.mrb[60].mxu0 }
 0x2af   : > { %v7162_v8 = vpop.f32.mrb[61].mxu0 }
 0x2b0   : > { %v7164_v26 = vpop.f32.mrb[62].mxu0 }
 0x2b1   : > { %v7166_v28 = vpop.f32.mrb[63].mxu0 }
 0x2b6   : > { %v5245_v34 = vpop.f32.mrb[32].mxu0 }
 0x2b7   : > { %v2334_v45 = vpop.f32.mrb[33].mxu0 }
 0x2b8   : > { %v5246_v30 = vpop.f32.mrb[34].mxu0 }
 0x2b9   : > { %v2337_v23 = vpop.f32.mrb[35].mxu0 }
 0x2be   : > { %v5249_v15 = vpop.f32.mrb[36].mxu0 }
 0x2bf   : > { %v2350_v1 = vpop.f32.mrb[37].mxu0 }
 0x2c0   : > { %v5250_v16 = vpop.f32.mrb[38].mxu0 }
 0x2c1   : > { %v2353_v57 = vpop.f32.mrb[39].mxu0 }
 0x338   : > { %v5425_v13 = vpop.f32.mrb[24].mxu1 }
 0x339   : > { %v5495_v35 = vadd.f32 %v5425_v13, %v5245_v34  ;;  %v3960_v4 = vpop.f32.mrb[25].mxu1 }
 0x33a   : > { %v5496_v7 = vadd.f32 %v3960_v4, %v2334_v45  ;;  %v5426_v56 = vpop.f32.mrb[26].mxu1 }
 0x33b   : > { %v4128_v18 = vadd.f32 %v5495_v35, %v7174_v17  ;;  %v5497_v14 = vadd.f32 %v5426_v56, %v5246_v30  ;;  %v3963_v39 = vpop.f32.mrb[27].mxu1 }
 0x33c   : > { %v4126_v38 = vadd.f32 %v5496_v7, %v7174_v17  ;;  %v5498_v44 = vadd.f32 %v3963_v39, %v2337_v23 }
 0x33d   : > { %v4129_v50 = vadd.f32 %v5497_v14, %v7174_v17  ;;  %v4160_v52 = vmax.f32 %v4128_v18, 0.0 }
 0x33e   : > { %v4127_v25 = vadd.f32 %v5498_v44, %v7174_v17  ;;  %v4158_v0 = vmax.f32 %v4126_v38, 0.0 }
 0x33f   : > { %v4161_v24 = vmax.f32 %v4129_v50, 0.0 }
 0x340   : > { %v4159_v61 = vmax.f32 %v4127_v25, 0.0  ;;  %v5429_v22 = vpop.f32.mrb[28].mxu1 }
 0x341   : > { %v4191_v36 = vpack.c.bf16 %v4161_v24, %v4160_v52  ;;  %v5499_v29 = vadd.f32 %v5429_v22, %v5249_v15  ;;  %v3976_v62 = vpop.f32.mrb[29].mxu1 }
 0x342   : > { %v4190_v5 = vpack.c.bf16 %v4159_v61, %v4158_v0  ;;  %v5500_v9 = vadd.f32 %v3976_v62, %v2350_v1  ;;  %v5430_v41 = vpop.f32.mrb[30].mxu1 }
 0x343   : > { %v4132_v59 = vadd.f32 %v5499_v29, %v7174_v17  ;;  %v5501_v54 = vadd.f32 %v5430_v41, %v5250_v16  ;;  %v3979_v37 = vpop.f32.mrb[31].mxu1 }
 0x344   : > { %v4130_v43 = vadd.f32 %v5500_v9, %v7174_v17  ;;  %v5502_v48 = vadd.f32 %v3979_v37, %v2353_v57  ;;  %5459 = vmatprep.mubr.msk.bf16.mxu0 %vm7800_vm12, %v4190_v5 }
 0x345   : > { %v4133_v42 = vadd.f32 %v5501_v54, %v7174_v17  ;;  %5460 = vmatmul.mubr.msk.bf16.vlgmr.msra.gmra.mrb[64].mxu0 %vm7801_vm1, %v4191_v36  ;;  %v4164_v34 = vmax.f32 %v4132_v59, 0.0 }
 0x346   : > { %v4131_v27 = vadd.f32 %v5502_v48, %v7174_v17  ;;  %v4162_v30 = vmax.f32 %v4130_v43, 0.0 }
 0x347   : > { %v4165_v45 = vmax.f32 %v4133_v42, 0.0 }
 0x348   : > { %v4163_v23 = vmax.f32 %v4131_v27, 0.0  ;;  %v5433_v15 = vpop.f32.mrb[0].mxu1 }
 0x349   : > { %v4193_v1 = vpack.c.bf16 %v4165_v45, %v4164_v34  ;;  %v5503_v16 = vadd.f32 %v5433_v15, %v7109_v12  ;;  %v3992_v63 = vpop.f32.mrb[1].mxu1 }
 0x34a   : > { %v4192_v13 = vpack.c.bf16 %v4163_v23, %v4162_v30  ;;  %v5504_v57 = vadd.f32 %v3992_v63, %v7111_v6  ;;  %v5434_v35 = vpop.f32.mrb[2].mxu1 }
 0x34b   : > { %v4136_v4 = vadd.f32 %v5503_v16, %v7174_v17  ;;  %v5505_v7 = vadd.f32 %v5434_v35, %v7113_v20  ;;  %v3995_v56 = vpop.f32.mrb[3].mxu1 }
 0x34c   : > { %v4134_v18 = vadd.f32 %v5504_v57, %v7174_v17  ;;  %v5506_v14 = vadd.f32 %v3995_v56, %v7115_v21  ;;  %5463 = vmatprep.mubr.msk.bf16.mxu0 %vm7802_vm2, %v4192_v13 }
 0x34d   : > { %v4137_v39 = vadd.f32 %v5505_v7, %v7174_v17  ;;  %5464 = vmatmul.mubr.msk.bf16.gmra.mrb[68].mxu0 %vm7803_vm6, %v4193_v1  ;;  %v4168_v38 = vmax.f32 %v4136_v4, 0.0 }
 0x34e   : > { %v4135_v12 = vadd.f32 %v5506_v14, %v7174_v17  ;;  %v4166_v44 = vmax.f32 %v4134_v18, 0.0 }
 0x34f   : > { %v4169_v6 = vmax.f32 %v4137_v39, 0.0 }
 0x350   : > { %v4167_v50 = vmax.f32 %v4135_v12, 0.0  ;;  %v5437_v25 = vpop.f32.mrb[4].mxu1 }
 0x351   : > { %v4195_v52 = vpack.c.bf16 %v4169_v6, %v4168_v38  ;;  %v5507_v20 = vadd.f32 %v5437_v25, %v7121_v32  ;;  %v4008_v24 = vpop.f32.mrb[5].mxu1 }
 0x352   : > { %v4194_v0 = vpack.c.bf16 %v4167_v50, %v4166_v44  ;;  %v5508_v21 = vadd.f32 %v4008_v24, %v7123_v11  ;;  %v5438_v61 = vpop.f32.mrb[6].mxu1 }
 0x353   : > { %v4140_v22 = vadd.f32 %v5507_v20, %v7174_v17  ;;  %v5509_v36 = vadd.f32 %v5438_v61, %v7125_v53  ;;  %v4011_v29 = vpop.f32.mrb[7].mxu1 }
 0x354   : > { %v4138_v62 = vadd.f32 %v5508_v21, %v7174_v17  ;;  %v5510_v5 = vadd.f32 %v4011_v29, %v7127_v51  ;;  %5467 = vmatprep.mubr.msk.bf16.mxu0 %vm7804_vm9, %v4194_v0 }
 0x355   : > { %v4141_v9 = vadd.f32 %v5509_v36, %v7174_v17  ;;  %5468 = vmatmul.mubr.msk.bf16.gmra.mrb[72].mxu0 %vm7725_vm0, %v4195_v52  ;;  %v4172_v41 = vmax.f32 %v4140_v22, 0.0 }
 0x356   : > { %v4139_v32 = vadd.f32 %v5510_v5, %v7174_v17  ;;  %v4170_v59 = vmax.f32 %v4138_v62, 0.0 }
 0x357   : > { %v4173_v11 = vmax.f32 %v4141_v9, 0.0 }
 0x358   : > { %v4171_v54 = vmax.f32 %v4139_v32, 0.0  ;;  %v5441_v37 = vpop.f32.mrb[8].mxu1 }
 0x359   : > { %v4197_v43 = vpack.c.bf16 %v4173_v11, %v4172_v41  ;;  %v5511_v53 = vadd.f32 %v5441_v37, %v7135_v2  ;;  %v4024_v48 = vpop.f32.mrb[9].mxu1 }
 0x35a   : > { %v4196_v42 = vpack.c.bf16 %v4171_v54, %v4170_v59  ;;  %v5512_v51 = vadd.f32 %v4024_v48, %v7137_v19  ;;  %v5442_v27 = vpop.f32.mrb[10].mxu1 }
 0x35b   : > { %v4144_v34 = vadd.f32 %v5511_v53, %v7174_v17  ;;  %v5513_v45 = vadd.f32 %v5442_v27, %v7139_v31  ;;  %v4027_v30 = vpop.f32.mrb[11].mxu1 }
 0x35c   : > { %v4142_v23 = vadd.f32 %v5512_v51, %v7174_v17  ;;  %v5514_v15 = vadd.f32 %v4027_v30, %v7141_v46  ;;  %5471 = vmatprep.mubr.msk.bf16.mxu0 %vm7805_vm3, %v4196_v42 }
 0x35d   : > { %v4145_v1 = vadd.f32 %v5513_v45, %v7174_v17  ;;  %5472 = vmatmul.mubr.msk.bf16.gmra.mrb[76].mxu0 %vm7806_vm13, %v4197_v43  ;;  %v4176_v16 = vmax.f32 %v4144_v34, 0.0 }
 0x35e   : > { %v4143_v2 = vadd.f32 %v5514_v15, %v7174_v17  ;;  %v4174_v63 = vmax.f32 %v4142_v23, 0.0 }
 0x35f   : > { %v4177_v19 = vmax.f32 %v4145_v1, 0.0  ;;  %v4440_v1 = vld [vmem:[%s5993_s23 + $0x10] sm:$0xff] }
 0x360   : > { %v4175_v13 = vmax.f32 %v4143_v2, 0.0  ;;  %v5445_v57 = vpop.f32.mrb[12].mxu1 }
 0x361   : > { %v4199_v35 = vpack.c.bf16 %v4177_v19, %v4176_v16  ;;  %v5515_v31 = vadd.f32 %v5445_v57, %v7144_v55  ;;  %v4040_v4 = vpop.f32.mrb[13].mxu1  ;;  %v4438_v19 = vld [vmem:[%s5993_s23] sm:$0xff]  ;;  %v4441_v57 = vld [vmem:[%s5993_s23 + $0x18] sm:$0xff] }
 0x362   : > { %v4198_v7 = vpack.c.bf16 %v4175_v13, %v4174_v63  ;;  %v5516_v46 = vadd.f32 %v4040_v4, %v7146_v58  ;;  %v5446_v56 = vpop.f32.mrb[14].mxu1 }
 0x363   : > { %v4148_v18 = vadd.f32 %v5515_v31, %v7174_v17  ;;  %v5517_v14 = vadd.f32 %v5446_v56, %v7148_v40  ;;  %v4043_v39 = vpop.f32.mrb[15].mxu1 }
 0x364   : > { %v4146_v12 = vadd.f32 %v5516_v46, %v7174_v17  ;;  %v5518_v38 = vadd.f32 %v4043_v39, %v7150_v49  ;;  %5475 = vmatprep.mubr.msk.bf16.mxu0 %vm7807_vm7, %v4198_v7  ;;  %v4439_v7 = vld [vmem:[%s5993_s23 + $0x8] sm:$0xff] }
 0x365   : > { %v4149_v6 = vadd.f32 %v5517_v14, %v7174_v17  ;;  %5476 = vmatmul.mubr.msk.bf16.gmra.mrb[80].mxu0 %vm7808_vm14, %v4199_v35  ;;  %v4180_v44 = vmax.f32 %v4148_v18, 0.0 }
 0x366   : > { %v4147_v55 = vadd.f32 %v5518_v38, %v7174_v17  ;;  %v4178_v50 = vmax.f32 %v4146_v12, 0.0 }
 0x367   : > { %v4181_v58 = vmax.f32 %v4149_v6, 0.0 }
 0x368   : > { %v4179_v25 = vmax.f32 %v4147_v55, 0.0  ;;  %v5449_v52 = vpop.f32.mrb[16].mxu1 }
 0x369   : > { %v4201_v20 = vpack.c.bf16 %v4181_v58, %v4180_v44  ;;  %v5519_v40 = vadd.f32 %v5449_v52, %v7152_v10  ;;  %v4056_v24 = vpop.f32.mrb[17].mxu1  ;;  %v4444_v44 = vld [vmem:[%s5993_s23 + $0x30] sm:$0xff] }
 0x36a   : > { %v4200_v0 = vpack.c.bf16 %v4179_v25, %v4178_v50  ;;  %v5520_v49 = vadd.f32 %v4056_v24, %v7154_v3  ;;  %v5450_v21 = vpop.f32.mrb[18].mxu1  ;;  %v4442_v25 = vld [vmem:[%s5993_s23 + $0x20] sm:$0xff] }
 0x36b   : > { %v4152_v61 = vadd.f32 %v5519_v40, %v7174_v17  ;;  %v5521_v22 = vadd.f32 %v5450_v21, %v7156_v60  ;;  %v4059_v36 = vpop.f32.mrb[19].mxu1  ;;  %v4445_v40 = vld [vmem:[%s5993_s23 + $0x38] sm:$0xff]  ;;  %v4443_v21 = vld [vmem:[%s5993_s23 + $0x28] sm:$0xff] }
 0x36c   : > { %v4150_v29 = vadd.f32 %v5520_v49, %v7174_v17  ;;  %v5522_v62 = vadd.f32 %v4059_v36, %v7158_v33  ;;  %5479 = vmatprep.mubr.msk.bf16.mxu0 %vm7809_vm15, %v4200_v0 }
 0x36d   : > { %v4153_v5 = vadd.f32 %v5521_v22, %v7174_v17  ;;  %5480 = vmatmul.mubr.msk.bf16.gmra.mrb[84].mxu0 %vm7810_vm4, %v4201_v20  ;;  %v4184_v9 = vmax.f32 %v4152_v61, 0.0 }
 0x36e   : > { %v4151_v10 = vadd.f32 %v5522_v62, %v7174_v17  ;;  %v4182_v32 = vmax.f32 %v4150_v29, 0.0 }
 0x36f   : > { %v4185_v3 = vmax.f32 %v4153_v5, 0.0 }
 0x370   : > { %v4183_v41 = vmax.f32 %v4151_v10, 0.0  ;;  %v5453_v11 = vpop.f32.mrb[20].mxu1 }
 0x371   : > { %v4203_v59 = vpack.c.bf16 %v4185_v3, %v4184_v9  ;;  %v5523_v60 = vadd.f32 %v5453_v11, %v7160_v47  ;;  %v4072_v54 = vpop.f32.mrb[21].mxu1 }
 0x372   : > { %v4202_v37 = vpack.c.bf16 %v4183_v41, %v4182_v32  ;;  %v5524_v33 = vadd.f32 %v4072_v54, %v7162_v8  ;;  %v5454_v43 = vpop.f32.mrb[22].mxu1  ;;  %v4448_v32 = vld [vmem:[%s5993_s23 + $0x50] sm:$0xff] }
 0x373   : > { %v4156_v53 = vadd.f32 %v5523_v60, %v7174_v17  ;;  %v5525_v48 = vadd.f32 %v5454_v43, %v7164_v26  ;;  %v4075_v42 = vpop.f32.mrb[23].mxu1 }
 0x374   : > { %v4154_v51 = vadd.f32 %v5524_v33, %v7174_v17  ;;  %v5526_v27 = vadd.f32 %v4075_v42, %v7166_v28  ;;  %5483 = vmatprep.mubr.msk.bf16.mxu0 %vm7811_vm5, %v4202_v37  ;;  %v7252_v28 = vld [vmem:[%s7412_s6] ss:$0 sm:$0xff]  ;;  %v4449_v37 = vld [vmem:[%s5993_s23 + $0x58] sm:$0xff] }
 0x375   : > { %v4157_v47 = vadd.f32 %v5525_v48, %v7174_v17  ;;  %5484 = vmatmul.mubr.msk.bf16.gmra.mrb[88].mxu0 %vm7812_vm10, %v4203_v59  ;;  %v4188_v34 = vmax.f32 %v4156_v53, 0.0  ;;  %v4446_v59 = vld [vmem:[%s5993_s23 + $0x40] sm:$0xff]  ;;  %v4447_v48 = vld [vmem:[%s5993_s23 + $0x48] sm:$0xff] }
 0x376   : > { %v4155_v8 = vadd.f32 %v5526_v27, %v7174_v17  ;;  %v4186_v26 = vmax.f32 %v4154_v51, 0.0 }
 0x377   : > { %v4189_v45 = vmax.f32 %v4157_v47, 0.0 }
 0x378   : > { %v4187_v30 = vmax.f32 %v4155_v8, 0.0 }
 0x379   : > { %v4205_v23 = vpack.c.bf16 %v4189_v45, %v4188_v34 }
 0x37a   : > { %v4204_v15 = vpack.c.bf16 %v4187_v30, %v4186_v26 }
 0x37c   : > { %5487 = vmatprep.mubr.msk.bf16.mxu0 %vm7813_vm8, %v4204_v15 }
 0x37d   : > { %5488 = vmatmul.mubr.msk.bf16.gmra.mrb[92].mxu0 %vm7814_vm11, %v4205_v23  ;;  %v4452_v23 = vld [vmem:[%s5993_s23 + $0x70] sm:$0xff] }
 0x418   : > { %v5461_v17 = vpop.f32.mrb[64].mxu0 }
 0x419   : > { %v4320_v2 = vadd.f32 %v5461_v17, %v7252_v28  ;;  %v4311_v16 = vpop.f32.mrb[65].mxu0 }
 0x41a   : > { %v4312_v63 = vadd.f32 %v7252_v28, %v4311_v16  ;;  %v5462_v13 = vpop.f32.mrb[66].mxu0 }
 0x41b   : > { %v4472_v35 = vadd.f32 %v4440_v1, %v4320_v2  ;;  %v4323_v31 = vadd.f32 %v5462_v13, %v7252_v28  ;;  %v4314_v4 = vpop.f32.mrb[67].mxu0  ;;  %v4450_v1 = vld [vmem:[%s5993_s23 + $0x60] sm:$0xff] }
 0x41c   : > { %v4470_v46 = vadd.f32 %v4438_v19, %v4312_v63  ;;  %v4315_v56 = vadd.f32 %v7252_v28, %v4314_v4  ;;  %v4453_v19 = vld [vmem:[%s5993_s23 + $0x78] sm:$0xff] }
 0x41d   : > { %v4504_v18 = vmax.f32 %v4472_v35, 0.0  ;;  %v4473_v14 = vadd.f32 %v4441_v57, %v4323_v31  ;;  %v4451_v35 = vld [vmem:[%s5993_s23 + $0x68] sm:$0xff] }
 0x41e   : > { %v4502_v39 = vmax.f32 %v4470_v46, 0.0  ;;  %v4471_v12 = vadd.f32 %v4439_v7, %v4315_v56 }
 0x41f   : > { %4536 = vst [vmem:[%s7264_s20 + $0x10] sm:$0xff] %v4504_v18  ;;  %v4505_v38 = vmax.f32 %v4473_v14, 0.0 }
 0x420   : > { %4534 = vst [vmem:[%s7264_s20] sm:$0xff] %v4502_v39  ;;  %v4503_v6 = vmax.f32 %v4471_v12, 0.0  ;;  %v5465_v55 = vpop.f32.mrb[68].mxu0 }
 0x421   : > { %4537 = vst [vmem:[%s7264_s20 + $0x18] sm:$0xff] %v4505_v38  ;;  %v4336_v58 = vadd.f32 %v5465_v55, %v7252_v28  ;;  %v4327_v50 = vpop.f32.mrb[69].mxu0  ;;  %v4456_v38 = vld [vmem:[%s5993_s23 + $0x90] sm:$0xff] }
 0x422   : > { %4535 = vst [vmem:[%s7264_s20 + $0x8] sm:$0xff] %v4503_v6  ;;  %v4328_v52 = vadd.f32 %v7252_v28, %v4327_v50  ;;  %v5466_v20 = vpop.f32.mrb[70].mxu0 }
 0x423   : > { %v4476_v24 = vadd.f32 %v4444_v44, %v4336_v58  ;;  %v4339_v0 = vadd.f32 %v5466_v20, %v7252_v28  ;;  %v4330_v49 = vpop.f32.mrb[71].mxu0  ;;  %v4454_v44 = vld [vmem:[%s5993_s23 + $0x80] sm:$0xff] }
 0x424   : > { %v4474_v61 = vadd.f32 %v4442_v25, %v4328_v52  ;;  %v4331_v22 = vadd.f32 %v7252_v28, %v4330_v49  ;;  %v4457_v25 = vld [vmem:[%s5993_s23 + $0x98] sm:$0xff] }
 0x425   : > { %v4508_v36 = vmax.f32 %v4476_v24, 0.0  ;;  %v4477_v29 = vadd.f32 %v4445_v40, %v4339_v0  ;;  %v4455_v24 = vld [vmem:[%s5993_s23 + $0x88] sm:$0xff] }
 0x426   : > { %v4506_v62 = vmax.f32 %v4474_v61, 0.0  ;;  %v4475_v5 = vadd.f32 %v4443_v21, %v4331_v22 }
 0x427   : > { %4540 = vst [vmem:[%s7264_s20 + $0x30] sm:$0xff] %v4508_v36  ;;  %v4509_v10 = vmax.f32 %v4477_v29, 0.0 }
 0x428   : > { %4538 = vst [vmem:[%s7264_s20 + $0x20] sm:$0xff] %v4506_v62  ;;  %v4507_v9 = vmax.f32 %v4475_v5, 0.0  ;;  %v5469_v3 = vpop.f32.mrb[72].mxu0 }
 0x429   : > { %4541 = vst [vmem:[%s7264_s20 + $0x38] sm:$0xff] %v4509_v10  ;;  %v4352_v41 = vadd.f32 %v5469_v3, %v7252_v28  ;;  %v4343_v11 = vpop.f32.mrb[73].mxu0  ;;  %v4460_v10 = vld [vmem:[%s5993_s23 + $0xb0] sm:$0xff] }
 0x42a   : > { %4539 = vst [vmem:[%s7264_s20 + $0x28] sm:$0xff] %v4507_v9  ;;  %v4344_v60 = vadd.f32 %v7252_v28, %v4343_v11  ;;  %v5470_v54 = vpop.f32.mrb[74].mxu0 }
 0x42b   : > { %v4480_v33 = vadd.f32 %v4448_v32, %v4352_v41  ;;  %v4355_v43 = vadd.f32 %v5470_v54, %v7252_v28  ;;  %v4346_v53 = vpop.f32.mrb[75].mxu0  ;;  %v4458_v32 = vld [vmem:[%s5993_s23 + $0xa0] sm:$0xff] }
 0x42c   : > { %v4478_v42 = vadd.f32 %v4446_v59, %v4344_v60  ;;  %v4347_v51 = vadd.f32 %v7252_v28, %v4346_v53  ;;  %v4461_v59 = vld [vmem:[%s5993_s23 + $0xb8] sm:$0xff] }
 0x42d   : > { %v4512_v27 = vmax.f32 %v4480_v33, 0.0  ;;  %v4481_v47 = vadd.f32 %v4449_v37, %v4355_v43  ;;  %v4459_v33 = vld [vmem:[%s5993_s23 + $0xa8] sm:$0xff] }
 0x42e   : > { %v4510_v8 = vmax.f32 %v4478_v42, 0.0  ;;  %v4479_v34 = vadd.f32 %v4447_v48, %v4347_v51 }
 0x42f   : > { %4544 = vst [vmem:[%s7264_s20 + $0x50] sm:$0xff] %v4512_v27  ;;  %v4513_v45 = vmax.f32 %v4481_v47, 0.0 }
 0x430   : > { %4542 = vst [vmem:[%s7264_s20 + $0x40] sm:$0xff] %v4510_v8  ;;  %v4511_v26 = vmax.f32 %v4479_v34, 0.0  ;;  %v5473_v30 = vpop.f32.mrb[76].mxu0 }
 0x431   : > { %4545 = vst [vmem:[%s7264_s20 + $0x58] sm:$0xff] %v4513_v45  ;;  %v4368_v15 = vadd.f32 %v5473_v30, %v7252_v28  ;;  %v4359_v17 = vpop.f32.mrb[77].mxu0  ;;  %v4464_v45 = vld [vmem:[%s5993_s23 + $0xd0] sm:$0xff] }
 0x432   : > { %4543 = vst [vmem:[%s7264_s20 + $0x48] sm:$0xff] %v4511_v26  ;;  %v4360_v2 = vadd.f32 %v7252_v28, %v4359_v17  ;;  %v5474_v16 = vpop.f32.mrb[78].mxu0 }
 0x433   : > { %v4484_v63 = vadd.f32 %v4452_v23, %v4368_v15  ;;  %v4371_v13 = vadd.f32 %v5474_v16, %v7252_v28  ;;  %v4362_v57 = vpop.f32.mrb[79].mxu0  ;;  %v4462_v23 = vld [vmem:[%s5993_s23 + $0xc0] sm:$0xff] }
 0x434   : > { %v4482_v31 = vadd.f32 %v4450_v1, %v4360_v2  ;;  %v4363_v4 = vadd.f32 %v7252_v28, %v4362_v57  ;;  %v4465_v1 = vld [vmem:[%s5993_s23 + $0xd8] sm:$0xff] }
 0x435   : > { %v4516_v7 = vmax.f32 %v4484_v63, 0.0  ;;  %v4485_v46 = vadd.f32 %v4453_v19, %v4371_v13  ;;  %v4463_v63 = vld [vmem:[%s5993_s23 + $0xc8] sm:$0xff] }
 0x436   : > { %v4514_v56 = vmax.f32 %v4482_v31, 0.0  ;;  %v4483_v18 = vadd.f32 %v4451_v35, %v4363_v4 }
 0x437   : > { %4548 = vst [vmem:[%s7264_s20 + $0x70] sm:$0xff] %v4516_v7  ;;  %v4517_v14 = vmax.f32 %v4485_v46, 0.0 }
 0x438   : > { %4546 = vst [vmem:[%s7264_s20 + $0x60] sm:$0xff] %v4514_v56  ;;  %v4515_v39 = vmax.f32 %v4483_v18, 0.0  ;;  %v5477_v12 = vpop.f32.mrb[80].mxu0 }
 0x439   : > { %4549 = vst [vmem:[%s7264_s20 + $0x78] sm:$0xff] %v4517_v14  ;;  %v4384_v6 = vadd.f32 %v5477_v12, %v7252_v28  ;;  %v4375_v55 = vpop.f32.mrb[81].mxu0  ;;  %v4468_v14 = vld [vmem:[%s5993_s23 + $0xf0] sm:$0xff] }
 0x43a   : > { %4547 = vst [vmem:[%s7264_s20 + $0x68] sm:$0xff] %v4515_v39  ;;  %v4376_v58 = vadd.f32 %v7252_v28, %v4375_v55  ;;  %v5478_v50 = vpop.f32.mrb[82].mxu0 }
 0x43b   : > { %v4488_v52 = vadd.f32 %v4456_v38, %v4384_v6  ;;  %v4387_v20 = vadd.f32 %v5478_v50, %v7252_v28  ;;  %v4378_v40 = vpop.f32.mrb[83].mxu0  ;;  %v4466_v38 = vld [vmem:[%s5993_s23 + $0xe0] sm:$0xff] }
 0x43c   : > { %v4486_v0 = vadd.f32 %v4454_v44, %v4376_v58  ;;  %v4379_v49 = vadd.f32 %v7252_v28, %v4378_v40  ;;  %v4469_v44 = vld [vmem:[%s5993_s23 + $0xf8] sm:$0xff] }
 0x43d   : > { %v4520_v21 = vmax.f32 %v4488_v52, 0.0  ;;  %v4489_v61 = vadd.f32 %v4457_v25, %v4387_v20  ;;  %v4467_v52 = vld [vmem:[%s5993_s23 + $0xe8] sm:$0xff]  ;;  %s5823_s23 = scalar_lea.vmem %s7358_s22, 4096 }
 0x43e   : > { %v4518_v22 = vmax.f32 %v4486_v0, 0.0  ;;  %v4487_v36 = vadd.f32 %v4455_v24, %v4379_v49  ;;  %p5824_p11 = scmp.ne.s32.totalorder %s7358_s22, %s5823_s23  ;;  %p5831_p1 = scmp.lt.s32.totalorder %s5829_s15, %s5823_s23 }
 0x43f   : > { %4552 = vst [vmem:[%s7264_s20 + $0x90] sm:$0xff] %v4520_v21  ;;  %v4521_v29 = vmax.f32 %v4489_v61, 0.0 }
 0x440   : > { %4550 = vst [vmem:[%s7264_s20 + $0x80] sm:$0xff] %v4518_v22  ;;  %v4519_v62 = vmax.f32 %v4487_v36, 0.0  ;;  %v5481_v5 = vpop.f32.mrb[84].mxu0  ;;  %p5825_p12 = pnand %p5824_p11, %p5969_p5  ;;  %p5832_p2 = por %p5831_p1, %p5830_p0 }
 0x441   : > { %4553 = vst [vmem:[%s7264_s20 + $0x98] sm:$0xff] %v4521_v29  ;;  %v4400_v9 = vadd.f32 %v5481_v5, %v7252_v28  ;;  %v4391_v3 = vpop.f32.mrb[85].mxu0 }
 0x442   : > { %4551 = vst [vmem:[%s7264_s20 + $0x88] sm:$0xff] %v4519_v62  ;;  %v4392_v41 = vadd.f32 %v7252_v28, %v4391_v3  ;;  %v5482_v11 = vpop.f32.mrb[86].mxu0  ;;  %p5826_p13 = pneg %p5825_p12 }
 0x443   : > { %v4492_v60 = vadd.f32 %v4460_v10, %v4400_v9  ;;  %v4403_v54 = vadd.f32 %v5482_v11, %v7252_v28  ;;  %v4394_v37 = vpop.f32.mrb[87].mxu0 }
 0x444   : > { %v4490_v43 = vadd.f32 %v4458_v32, %v4392_v41  ;;  %v4395_v53 = vadd.f32 %v7252_v28, %v4394_v37  ;;  %p5833_p3 = pnand %p5832_p2, %p5826_p13 }
 0x445   : > { %v4524_v48 = vmax.f32 %v4492_v60, 0.0  ;;  %v4493_v42 = vadd.f32 %v4461_v59, %v4403_v54 }
 0x446   : > { %v4522_v51 = vmax.f32 %v4490_v43, 0.0  ;;  %v4491_v27 = vadd.f32 %v4459_v33, %v4395_v53 }
 0x447   : > { %4556 = vst [vmem:[%s7264_s20 + $0xb0] sm:$0xff] %v4524_v48  ;;  %v4525_v47 = vmax.f32 %v4493_v42, 0.0 }
 0x448   : > { %4554 = vst [vmem:[%s7264_s20 + $0xa0] sm:$0xff] %v4522_v51  ;;  %v4523_v8 = vmax.f32 %v4491_v27, 0.0  ;;  %v5485_v34 = vpop.f32.mrb[88].mxu0 }
 0x449   : > { %4557 = vst [vmem:[%s7264_s20 + $0xb8] sm:$0xff] %v4525_v47  ;;  %v4416_v26 = vadd.f32 %v5485_v34, %v7252_v28  ;;  %v4407_v30 = vpop.f32.mrb[89].mxu0 }
 0x44a   : > { %4555 = vst [vmem:[%s7264_s20 + $0xa8] sm:$0xff] %v4523_v8  ;;  %v4408_v15 = vadd.f32 %v7252_v28, %v4407_v30  ;;  %v5486_v17 = vpop.f32.mrb[90].mxu0 }
 0x44b   : > { %v4496_v2 = vadd.f32 %v4464_v45, %v4416_v26  ;;  %v4419_v16 = vadd.f32 %v5486_v17, %v7252_v28  ;;  %v4410_v19 = vpop.f32.mrb[91].mxu0 }
 0x44c   : > { %v4494_v13 = vadd.f32 %v4462_v23, %v4408_v15  ;;  %v4411_v57 = vadd.f32 %v7252_v28, %v4410_v19 }
 0x44d   : > { %v4528_v35 = vmax.f32 %v4496_v2, 0.0  ;;  %v4497_v31 = vadd.f32 %v4465_v1, %v4419_v16 }
 0x44e   : > { %v4526_v4 = vmax.f32 %v4494_v13, 0.0  ;;  %v4495_v7 = vadd.f32 %v4463_v63, %v4411_v57 }
 0x44f   : > { %4560 = vst [vmem:[%s7264_s20 + $0xd0] sm:$0xff] %v4528_v35  ;;  %v4529_v46 = vmax.f32 %v4497_v31, 0.0 }
 0x450   : > { %4558 = vst [vmem:[%s7264_s20 + $0xc0] sm:$0xff] %v4526_v4  ;;  %v4527_v56 = vmax.f32 %v4495_v7, 0.0  ;;  %v5489_v18 = vpop.f32.mrb[92].mxu0 }
 0x451   : > { %4561 = vst [vmem:[%s7264_s20 + $0xd8] sm:$0xff] %v4529_v46  ;;  %v4432_v39 = vadd.f32 %v5489_v18, %v7252_v28  ;;  %v4423_v12 = vpop.f32.mrb[93].mxu0 }
 0x452   : > { %4559 = vst [vmem:[%s7264_s20 + $0xc8] sm:$0xff] %v4527_v56  ;;  %v4424_v6 = vadd.f32 %v7252_v28, %v4423_v12  ;;  %v5490_v55 = vpop.f32.mrb[94].mxu0 }
 0x453   : > { %v4500_v58 = vadd.f32 %v4468_v14, %v4432_v39  ;;  %v4435_v50 = vadd.f32 %v5490_v55, %v7252_v28  ;;  %v4426_v25 = vpop.f32.mrb[95].mxu0 }
 0x454   : > { %v4498_v20 = vadd.f32 %v4466_v38, %v4424_v6  ;;  %v4427_v40 = vadd.f32 %v7252_v28, %v4426_v25 }
 0x455   : > { %v4532_v24 = vmax.f32 %v4500_v58, 0.0  ;;  %v4501_v0 = vadd.f32 %v4469_v44, %v4435_v50 }
 0x456   : > { %v4530_v49 = vmax.f32 %v4498_v20, 0.0  ;;  %v4499_v21 = vadd.f32 %v4467_v52, %v4427_v40 }
 0x457   : > { %4564 = vst [vmem:[%s7264_s20 + $0xf0] sm:$0xff] %v4532_v24  ;;  %v4533_v61 = vmax.f32 %v4501_v0, 0.0 }
 0x458   : > { %4562 = vst [vmem:[%s7264_s20 + $0xe0] sm:$0xff] %v4530_v49  ;;  %v4531_v28 = vmax.f32 %v4499_v21, 0.0 }
 0x459   : > { %4565 = vst [vmem:[%s7264_s20 + $0xf8] sm:$0xff] %v4533_v61 }
 0x45a   : > { %4563 = vst [vmem:[%s7264_s20 + $0xe8] sm:$0xff] %v4531_v28 }
 0x45b   : > { %5836 = shalt.err (!%p5833_p3)
}
 0x45c   : > { %s5837_s16 = scalar_lea.hbm %s7356_s9, 4096  ;;  %s5841_s19 = scalar_lea.hbm %s7413_s7, 8192 }
 0x45d   : > { %p5838_p4 = scmp.ne.s32.totalorder %s7356_s9, %s5837_s16  ;;  %p5842_p9 = scmp.lt.u32.totalorder %s7356_s9, %s7413_s7 }
 0x45e   : > { %p5843_p10 = scmp.lt.u32.totalorder %s5841_s19, %s5837_s16  ;;  %p5845_p12 = scmp.lt.u32.totalorder %s5837_s16, %s7356_s9 }
 0x45f   : > { %p5839_p7 = pnand %p5838_p4, %p5969_p5 }
 0x460   : > { %p5844_p11 = por %p5843_p10, %p5842_p9 }
 0x461   : > { %p5840_p8 = pneg %p5839_p7 }
 0x462   : > { %p5846_p13 = por %p5845_p12, %p5844_p11 }
 0x464   : > { %p5847_p0 = pnand %p5846_p13, %p5840_p8 }
 0x466   : > { %5850 = shalt.err (!%p5847_p0)
}
 0x467   : > { %s5889_s29 = smov 128   ;;  %s5890_s8 = smov 8  }
 0x468   : > { %5751 = dma.vmem_to_hbm [thread:$0]  (%p5969_p5), %s7358_s22, 4096, %s7356_s9, %s7365_s28, %s5889_s29, %s5889_s29, %s5890_s8  }
 0x469 PF: > { %p5757_p1 = scmp.ge.s32.totalorder %s5885_s27, 2  ;;  %s4595_s23 = sand.u32 1, %s5873_s24  }
 0x46a   : > { %s4596_s13 = scalar_lea.sflag [#allocation4], %s4595_s23 }
 0x46b   : > { %p5754_p2 = pnand %p5757_p1, %p5973_p6 }
 0x46d   : > { %5868 = dma.done.wait (!%p5754_p2), %s4596_s13, 4096  }
 0x46e   : > { %5870 = vsyncadd (!%p5754_p2), %s4596_s13, 4294963200  ;;  %p17_p3 = scmp.ge.s32.totalorder %s5956_s30, 4   ;;  %s7815_s24 = smov %s5877_s25 }
 0x46f   : > { %s7816_s25 = smov %s5881_s26  ;;  %s7817_s26 = smov %s5967_s10 }
 0x470   : > { %s7818_s27 = smov %s5956_s30  ;;  %19 = sbr.rel (!%p17_p3) target bundleno = 3 (0x3), region = 91 }
 0x477   :  { %4601 = vsyncpa [#allocation4], 1 }
 0x478   :  { %4603 = vsyncpa [#allocation4 + $0x1], 1 }

</bundles_post_ra>
